<compile_context>
chip_gen: v7x
topology: tpu7x:2x2x1
jax: 0.10.0
libtpu: 0.0.40
codegen_flags: <defaults>
</compile_context>

<pallas_src>
import functools

import jax
import jax.numpy as jnp
from jax.experimental import pallas as pl
from jax.experimental.pallas import tpu as pltpu  # noqa: F401


# =============================================================================
# Fused kernel: 3 DGN layers + LSTM input projection + two BiLSTMs
# =============================================================================
def _make_encoder_kernel(T, B, dgn_layout, H):
    TB = T * B
    SH = 4 * H  # concatenated hidden width of the 4 LSTM streams (= 2*V*hidden)
                # stream order: [lstm1_fwd | lstm2_fwd | lstm1_bwd | lstm2_bwd]

    def sigm(z):
        # exact sigmoid via tanh: EUP slot, no divide, no inf intermediates
        return 0.5 * (jnp.tanh(0.5 * z) + 1.0)

    def kernel(f_ref, dgnw_ref, dgnb_ref, lstmw_ref, lstmb_ref, out_ref):
        # ---------------------------------------------------------------
        # DGN stack: ONE block-structured matmul per layer on [fv|fe] rows.
        #   rows 0:TB    forward-time order   (feeds forward LSTM streams)
        #   rows TB:2TB  time-reversed copies (feeds backward LSTM streams)
        # ---------------------------------------------------------------
        f = f_ref[...]                                        # (2TB, 2*V*C0) f32
        for li, (off, rows, cols) in enumerate(dgn_layout):
            w = dgnw_ref[off:off + rows, 0:cols]              # bf16 (packed)
            b = dgnb_ref[li:li + 1, 0:cols]                   # f32 (BN folded)
            f = jnp.maximum(
                jnp.dot(f.astype(jnp.bfloat16), w,
                        preferred_element_type=jnp.float32) + b, 0.0)
        # f: (2TB, SH) rows of [fv3 | fe3]

        # ---------------------------------------------------------------
        # LSTM input projection: ONE matmul for all 4 streams.
        # gx column layout (width 4*SH): gate groups [i | f | o | g], each SH
        # wide, streams ordered [l1_f, l2_f, l1_b, l2_b] (H cols each) inside.
        # ---------------------------------------------------------------
        f_big = jnp.concatenate([f[0:TB, :], f[TB:2 * TB, :]], axis=-1)  # (TB, 2*SH)
        w_big = lstmw_ref[0:2 * SH, :]                        # (2*SH, 4*SH) bf16
        whh = lstmw_ref[2 * SH:3 * SH, :]                     # (SH,   4*SH) bf16
        gx = jnp.dot(f_big.astype(jnp.bfloat16), w_big,
                     preferred_element_type=jnp.float32) + lstmb_ref[...]

        # ---------------------------------------------------------------
        # 4-stream recurrence: one (B, SH) @ (SH, 4*SH) MXU push per step.
        # Gate math in f32 (v5e VPU/EUP have no bf16 path).
        # ---------------------------------------------------------------
        h = jnp.zeros((B, SH), jnp.float32)
        c = jnp.zeros((B, SH), jnp.float32)
        for t in range(T):                                    # statically unrolled
            g = gx[t * B:(t + 1) * B, :] + jnp.dot(
                h.astype(jnp.bfloat16), whh, preferred_element_type=jnp.float32)
            sg = sigm(g[:, 0:3 * SH])                         # i | f | o slabs
            gg = jnp.tanh(g[:, 3 * SH:4 * SH])                # g gate slab
            c = sg[:, SH:2 * SH] * c + sg[:, 0:SH] * gg
            h = sg[:, 2 * SH:3 * SH] * jnp.tanh(c)
            # lane-dense (B x 4H=128) store: cols 0:2H fwd streams (time t),
            # cols 2H:4H bwd streams (time T-1-t); wrapper flips the bwd half.
            out_ref[t * B:(t + 1) * B, :] = h

    return kernel


# =============================================================================
# One-time parameter folding / packing (model-load time, NOT inside jit)
# =============================================================================
def prepare_params(params, V, hidden):
    sM, tM = params["sM"], params["tM"]
    E = sM.shape[0]
    eyeV = jnp.eye(V, dtype=jnp.float32)
    eyeE = jnp.eye(E, dtype=jnp.float32)

    # ---- DGN layers: per layer one block matrix [[Avv, Ave], [Aev, Aee]] ----
    blocks = []
    for p in params["dgn_layers"]:
        cin = p["Wv"].shape[0] // 3
        Wv = p["Wv"] * p["bnv_s"]                    # fold BN (eval) into weights
        bv = p["bv"] * p["bnv_s"] + p["bnv_b"]
        We = p["We"] * p["bne_s"]
        be = p["be"] * p["bne_s"] + p["bne_b"]
        Wv0, Wv1, Wv2 = Wv[:cin], Wv[cin:2 * cin], Wv[2 * cin:]
        We0, We1, We2 = We[:cin], We[cin:2 * cin], We[2 * cin:]
        Avv = jnp.kron(eyeV, Wv0)                               # (V*cin, V*cout)
        Aev = jnp.kron(sM, Wv1) + jnp.kron(tM, Wv2)             # (E*cin, V*cout)
        Aee = jnp.kron(eyeE, We0)                               # (E*cin, E*cout)
        Ave = jnp.kron(sM.T, We1) + jnp.kron(tM.T, We2)         # (V*cin, E*cout)
        W_l = jnp.block([[Avv, Ave], [Aev, Aee]])
        b_l = jnp.concatenate([jnp.tile(bv, (1, V)), jnp.tile(be, (1, E))], axis=-1)
        blocks.append((W_l, b_l))

    # pack the layer matrices into one bf16 buffer; offsets aligned to the
    # bf16 sublane tile (16 rows) so in-kernel static slices start on tiles.
    layouts, off = [], 0
    for (w, _) in blocks:
        rows, cols = int(w.shape[0]), int(w.shape[1])
        layouts.append((off, rows, cols))
        off += -(-rows // 16) * 16
    max_cols = max(c for _, _, c in layouts)
    dgn_w = jnp.zeros((off, max_cols), jnp.bfloat16)
    dgn_b = jnp.zeros((8, max_cols), jnp.float32)
    for li, ((w, b), (o, rows, cols)) in enumerate(zip(blocks, layouts)):
        dgn_w = dgn_w.at[o:o + rows, 0:cols].set(w.astype(jnp.bfloat16))
        dgn_b = dgn_b.at[li, 0:cols].set(b[0])

    # ---- LSTMs: fold feature permute + gate reorder + 4-stream packing ------
    D = V * hidden
    H = D // 2
    SH = 4 * H
    assert blocks[-1][0].shape[1] == SH, "last DGN width must equal 2*V*hidden"

    def perm(wih):
        # LSTM input features are channel-major (c*V + v); the DGN kernel emits
        # vertex-major (v*hidden + c) -> fold the permutation into the rows.
        return wih.reshape(hidden, V, 4 * H).transpose(1, 0, 2).reshape(D, 4 * H)

    streams = [  # order: lstm1 fwd, lstm2 fwd, lstm1 bwd, lstm2 bwd
        (perm(params["lstm1"]["wih_f"]), params["lstm1"]["whh_f"], params["lstm1"]["b_f"]),
        (perm(params["lstm2"]["wih_f"]), params["lstm2"]["whh_f"], params["lstm2"]["b_f"]),
        (perm(params["lstm1"]["wih_b"]), params["lstm1"]["whh_b"], params["lstm1"]["b_b"]),
        (perm(params["lstm2"]["wih_b"]), params["lstm2"]["whh_b"], params["lstm2"]["b_b"]),
    ]
    w_big = jnp.zeros((2 * SH, 4 * SH), jnp.float32)   # rows: [fv3|fe3|fv3_rev|fe3_rev]
    whh_bd = jnp.zeros((SH, 4 * SH), jnp.float32)      # rows: [h_1f|h_2f|h_1b|h_2b]
    b_all = jnp.zeros((1, 4 * SH), jnp.float32)
    pt_chunk = (0, 1, 3, 2)          # kernel gate order i,f,o,g -> torch i,f,g,o
    for s, (wih, whh, b) in enumerate(streams):
        for g_idx in range(4):
            pt = pt_chunk[g_idx]
            col = g_idx * SH + s * H
            w_big = w_big.at[s * D:(s + 1) * D, col:col + H].set(
                wih[:, pt * H:(pt + 1) * H])
            whh_bd = whh_bd.at[s * H:(s + 1) * H, col:col + H].set(
                whh[:, pt * H:(pt + 1) * H])
            b_all = b_all.at[0, col:col + H].set(b[0, pt * H:(pt + 1) * H])
    lstm_w = jnp.concatenate([w_big, whh_bd], axis=0).astype(jnp.bfloat16)  # (3*SH, 4*SH)

    arrays = dict(dgn_w=dgn_w, dgn_b=dgn_b, lstm_w=lstm_w, lstm_b=b_all)
    meta = dict(dgn_layout=tuple(layouts), hidden=hidden)
    return arrays, meta


# =============================================================================
# Encoder forward (single fused Pallas launch; thin XLA glue around it)
# =============================================================================
@functools.partial(jax.jit, static_argnames=("dgn_layout", "hidden"))
def encoder_forward(fv5, fe5, dgn_w, dgn_b, lstm_w, lstm_b, *, dgn_layout, hidden):
    N, C, T, V, M = fv5.shape
    B = N * M
    TB = T * B
    H = (V * hidden) // 2

    # (N, C, T, V, M) -> rows (t, n, m) x features (v, c): (TB, V*C)
    fv_flat = jnp.transpose(fv5, (2, 0, 4, 3, 1)).reshape(TB, V * C)
    fe_flat = jnp.transpose(fe5, (2, 0, 4, 3, 1)).reshape(TB, V * C)
    f_fwd = jnp.concatenate([fv_flat, fe_flat], axis=-1)              # (TB, 2*V*C)
    # time-reversed copy feeds the backward LSTM streams (the DGN is row-wise,
    # so DGN(reversed rows) == reversed DGN output) -> recurrence needs no
    # per-step shuffles.
    f_rev = f_fwd.reshape(T, B, 2 * V * C)[::-1].reshape(TB, 2 * V * C)
    f_in = jnp.concatenate([f_fwd, f_rev], axis=0)                    # (2*TB, 2*V*C)

    out = pl.pallas_call(
        _make_encoder_kernel(T, B, dgn_layout, H),
        out_shape=jax.ShapeDtypeStruct((TB, 4 * H), jnp.float32),
    )(f_in, dgn_w, dgn_b, lstm_w, lstm_b)

    out = out.reshape(T, B, 4 * H)
    fwd = out[:, :, 0:2 * H]            # [lstm1_f | lstm2_f], time-ordered
    bwd = out[::-1, :, 2 * H:4 * H]     # [lstm1_b | lstm2_b], flip to time order
    yv = jnp.concatenate([fwd[:, :, 0:H], bwd[:, :, 0:H]], axis=-1)
    ye = jnp.concatenate([fwd[:, :, H:2 * H], bwd[:, :, H:2 * H]], axis=-1)
    return yv.reshape(T, N, M, 2 * H), ye.reshape(T, N, M, 2 * H)


# =============================================================================
# Pure-JAX reference (same math, raw/unfolded params) for correctness check
# =============================================================================
def _dgn_block_ref(fv, fe, sM, tM, p):
    fe_src = jnp.einsum("ev,btec->btvc", sM, fe)
    fe_tgt = jnp.einsum("ev,btec->btvc", tM, fe)
    fv_src = jnp.einsum("ev,btvc->btec", sM, fv)
    fv_tgt = jnp.einsum("ev,btvc->btec", tM, fv)
    fvp = jnp.concatenate([fv, fe_src, fe_tgt], axis=-1)
    fep = jnp.concatenate([fe, fv_src, fv_tgt], axis=-1)
    hv = jnp.maximum((fvp @ p["Wv"] + p["bv"]) * p["bnv_s"] + p["bnv_b"], 0.0)
    he = jnp.maximum((fep @ p["We"] + p["be"]) * p["bne_s"] + p["bne_b"], 0.0)
    return hv, he


def _lstm_dir_ref(x, wih, whh, b):
    H = whh.shape[0]
    B = x.shape[1]

    def step(carry, x_t):
        h, c = carry
        gates = x_t @ wih + h @ whh + b
        i = jax.nn.sigmoid(gates[:, :H])
        f = jax.nn.sigmoid(gates[:, H:2 * H])
        g = jnp.tanh(gates[:, 2 * H:3 * H])
        o = jax.nn.sigmoid(gates[:, 3 * H:])
        c = f * c + i * g
        h = o * jnp.tanh(c)
        return (h, c), h

    init = (jnp.zeros((B, H), jnp.float32), jnp.zeros((B, H), jnp.float32))
    _, ys = jax.lax.scan(step, init, x)
    return ys


def _bilstm_ref(x, p):
    fwd = _lstm_dir_ref(x, p["wih_f"], p["whh_f"], p["b_f"])
    bwd = _lstm_dir_ref(x[::-1], p["wih_b"], p["whh_b"], p["b_b"])[::-1]
    return jnp.concatenate([fwd, bwd], axis=-1)


def encoder_forward_ref(fv5, fe5, params):
    N, C, T, V, M = fv5.shape
    hidden = params["dgn_layers"][-1]["Wv"].shape[1]
    sM, tM = params["sM"], params["tM"]
    fv = jnp.transpose(fv5, (0, 4, 2, 3, 1)).reshape(N * M, T, V, C)
    fe = jnp.transpose(fe5, (0, 4, 2, 3, 1)).reshape(N * M, T, V, C)
    for lp in params["dgn_layers"]:
        fv, fe = _dgn_block_ref(fv, fe, sM, tM, lp)
    B = N * M
    xv = jnp.transpose(fv, (1, 0, 3, 2)).reshape(T, B, hidden * V)
    xe = jnp.transpose(fe, (1, 0, 3, 2)).reshape(T, B, hidden * V)
    yv = _bilstm_ref(xv, params["lstm1"])
    ye = _bilstm_ref(xe, params["lstm2"])
    return (yv.reshape(T, N, M, hidden * V), ye.reshape(T, N, M, hidden * V))


# =============================================================================
# Deterministic parameter init (shapes implied by Encoder.__init__)
# =============================================================================
def init_params(key, V=8, hidden_channel=8):
    keys = iter(jax.random.split(key, 64))
    nxt = lambda: next(keys)

    # graph incidence (num_edges == num_nodes == V): edge e: node e -> node e+1
    eye = jnp.eye(V, dtype=jnp.float32)
    sM = eye
    tM = jnp.roll(eye, shift=1, axis=1)

    bn_eps = 1e-5
    bn_scale = 1.0 / jnp.sqrt(1.0 + bn_eps)   # BN eval mode with default stats

    def lin(ci, co):
        s = 1.0 / jnp.sqrt(jnp.float32(ci))
        w = jax.random.uniform(nxt(), (ci, co), jnp.float32, -s, s)
        b = jax.random.uniform(nxt(), (1, co), jnp.float32, -s, s)
        return w, b

    layers = []
    for cin, cout in [(3, 6), (6, 12), (12, hidden_channel)]:
        Wv, bv = lin(3 * cin, cout)
        We, be = lin(3 * cin, cout)
        layers.append(dict(
            Wv=Wv, bv=bv, We=We, be=be,
            bnv_s=jnp.full((1, cout), bn_scale, jnp.float32),
            bnv_b=jnp.zeros((1, cout), jnp.float32),
            bne_s=jnp.full((1, cout), bn_scale, jnp.float32),
            bne_b=jnp.zeros((1, cout), jnp.float32),
        ))

    D = V * hidden_channel
    H = D // 2

    def lstm_params():
        s = 1.0 / jnp.sqrt(jnp.float32(H))
        u = lambda shape: jax.random.uniform(nxt(), shape, jnp.float32, -s, s)
        return dict(wih_f=u((D, 4 * H)), whh_f=u((H, 4 * H)), b_f=u((1, 4 * H)),
                    wih_b=u((D, 4 * H)), whh_b=u((H, 4 * H)), b_b=u((1, 4 * H)))

    return dict(sM=sM, tM=tM, dgn_layers=layers,
                lstm1=lstm_params(), lstm2=lstm_params())


if __name__ == "__main__":
    # small shapes consistent with the module: N batch, C=3 input channels,
    # T frames, V joints (= num_point), M persons (= num_person = 1)
    N, C, T, V, M = 2, 3, 8, 8, 1
    hidden_channel = 8   # -> LSTM input D = 64, hidden H = 32, 4 streams -> 128/512 lanes

    key = jax.random.PRNGKey(0)
    kp, kv, ke = jax.random.split(key, 3)
    params = init_params(kp, V=V, hidden_channel=hidden_channel)
    fv5 = jax.random.normal(kv, (N, C, T, V, M), jnp.float32)
    fe5 = jax.random.normal(ke, (N, C, T, V, M), jnp.float32)

    # fold/pack weights ONCE (model-load time), outside the jitted forward
    arrays, meta = prepare_params(params, V=V, hidden=hidden_channel)

    yv, ye = encoder_forward(fv5, fe5, arrays["dgn_w"], arrays["dgn_b"],
                             arrays["lstm_w"], arrays["lstm_b"],
                             dgn_layout=meta["dgn_layout"], hidden=hidden_channel)
    jax.block_until_ready((yv, ye))

    rv, re = encoder_forward_ref(fv5, fe5, params)
    assert yv.shape == (T, N, M, hidden_channel * V)
    assert ye.shape == (T, N, M, hidden_channel * V)
    # explicit bf16 matmul operands (f32 accumulation) on the kernel path,
    # f32 reference -> a few-percent tolerance; permutation/folding bugs would
    # produce O(0.1..1) errors and still fail this check.
    assert jnp.allclose(yv, rv, atol=2e-2, rtol=2e-2), float(jnp.max(jnp.abs(yv - rv)))
    assert jnp.allclose(ye, re, atol=2e-2, rtol=2e-2), float(jnp.max(jnp.abs(ye - re)))
    print("KERNEL_OK")
</pallas_src>

<mosaic_0001>
module attributes {stable_mosaic.version = 11 : i64} {
  func.func @kernel(%arg0: memref<32x48xf32, #tpu.memory_space<vmem>>, %arg1: memref<336x192xbf16, #tpu.memory_space<vmem>>, %arg2: memref<8x192xf32, #tpu.memory_space<vmem>>, %arg3: memref<384x512xbf16, #tpu.memory_space<vmem>>, %arg4: memref<1x512xf32, #tpu.memory_space<vmem>>, %arg5: memref<16x128xf32, #tpu.memory_space<vmem>>) attributes {dimension_semantics = [], scalar_prefetch = 0 : i64, scratch_operands = 0 : i64, tpu.core_type = #tpu.core_type<tc>} {
    %c0 = arith.constant 0 : index
    %c0_0 = arith.constant 0 : index
    %0 = vector.load %arg0[%c0, %c0_0] : memref<32x48xf32, #tpu.memory_space<vmem>>, vector<32x48xf32>
    %c0_1 = arith.constant 0 : index
    %c0_2 = arith.constant 0 : index
    %1 = vector.load %arg1[%c0_1, %c0_2] : memref<336x192xbf16, #tpu.memory_space<vmem>>, vector<48x96xbf16>
    %c0_3 = arith.constant 0 : index
    %c0_4 = arith.constant 0 : index
    %2 = vector.load %arg2[%c0_3, %c0_4] : memref<8x192xf32, #tpu.memory_space<vmem>>, vector<1x96xf32>
    %3 = arith.truncf %0 : vector<32x48xf32> to vector<32x48xbf16>
    %cst = arith.constant dense<0.000000e+00> : vector<32x96xf32>
    %4 = tpu.matmul %3, %1, %cst {dimension_numbers = #tpu.dot_dimension_numbers<[1], [0], [0], [1], [0, 0, 1, 1], [], []>} : vector<32x48xbf16>, vector<48x96xbf16>, vector<32x96xf32> -> vector<32x96xf32>
    %5 = vector.broadcast %2 : vector<1x96xf32> to vector<32x96xf32>
    %6 = arith.addf %4, %5 : vector<32x96xf32>
    %cst_5 = arith.constant 0.000000e+00 : f32
    %7 = vector.broadcast %cst_5 : f32 to vector<32x96xf32>
    %8 = arith.maximumf %6, %7 : vector<32x96xf32>
    %c48 = arith.constant 48 : index
    %c0_6 = arith.constant 0 : index
    %9 = vector.load %arg1[%c48, %c0_6] : memref<336x192xbf16, #tpu.memory_space<vmem>>, vector<96x192xbf16>
    %c1 = arith.constant 1 : index
    %c0_7 = arith.constant 0 : index
    %10 = vector.load %arg2[%c1, %c0_7] : memref<8x192xf32, #tpu.memory_space<vmem>>, vector<1x192xf32>
    %11 = arith.truncf %8 : vector<32x96xf32> to vector<32x96xbf16>
    %cst_8 = arith.constant dense<0.000000e+00> : vector<32x192xf32>
    %12 = tpu.matmul %11, %9, %cst_8 {dimension_numbers = #tpu.dot_dimension_numbers<[1], [0], [0], [1], [0, 0, 1, 1], [], []>} : vector<32x96xbf16>, vector<96x192xbf16>, vector<32x192xf32> -> vector<32x192xf32>
    %13 = vector.broadcast %10 : vector<1x192xf32> to vector<32x192xf32>
    %14 = arith.addf %12, %13 : vector<32x192xf32>
    %cst_9 = arith.constant 0.000000e+00 : f32
    %15 = vector.broadcast %cst_9 : f32 to vector<32x192xf32>
    %16 = arith.maximumf %14, %15 : vector<32x192xf32>
    %c144 = arith.constant 144 : index
    %c0_10 = arith.constant 0 : index
    %17 = vector.load %arg1[%c144, %c0_10] : memref<336x192xbf16, #tpu.memory_space<vmem>>, vector<192x128xbf16>
    %c2 = arith.constant 2 : index
    %c0_11 = arith.constant 0 : index
    %18 = vector.load %arg2[%c2, %c0_11] : memref<8x192xf32, #tpu.memory_space<vmem>>, vector<1x128xf32>
    %19 = arith.truncf %16 : vector<32x192xf32> to vector<32x192xbf16>
    %cst_12 = arith.constant dense<0.000000e+00> : vector<32x128xf32>
    %20 = tpu.matmul %19, %17, %cst_12 {dimension_numbers = #tpu.dot_dimension_numbers<[1], [0], [0], [1], [0, 0, 1, 1], [], []>} : vector<32x192xbf16>, vector<192x128xbf16>, vector<32x128xf32> -> vector<32x128xf32>
    %21 = vector.broadcast %18 : vector<1x128xf32> to vector<32x128xf32>
    %22 = arith.addf %20, %21 : vector<32x128xf32>
    %cst_13 = arith.constant 0.000000e+00 : f32
    %23 = vector.broadcast %cst_13 : f32 to vector<32x128xf32>
    %24 = arith.maximumf %22, %23 : vector<32x128xf32>
    %25 = vector.extract_strided_slice %24 {offsets = [0, 0], sizes = [16, 128], strides = [1, 1]} : vector<32x128xf32> to vector<16x128xf32>
    %26 = vector.extract_strided_slice %24 {offsets = [16, 0], sizes = [16, 128], strides = [1, 1]} : vector<32x128xf32> to vector<16x128xf32>
    %27 = tpu.concatenate %25, %26 in 1 : vector<16x128xf32>, vector<16x128xf32> -> vector<16x256xf32>
    %c0_14 = arith.constant 0 : index
    %c0_15 = arith.constant 0 : index
    %28 = vector.load %arg3[%c0_14, %c0_15] : memref<384x512xbf16, #tpu.memory_space<vmem>>, vector<256x512xbf16>
    %c256 = arith.constant 256 : index
    %c0_16 = arith.constant 0 : index
    %29 = vector.load %arg3[%c256, %c0_16] : memref<384x512xbf16, #tpu.memory_space<vmem>>, vector<128x512xbf16>
    %30 = arith.truncf %27 : vector<16x256xf32> to vector<16x256xbf16>
    %cst_17 = arith.constant dense<0.000000e+00> : vector<16x512xf32>
    %31 = tpu.matmul %30, %28, %cst_17 {dimension_numbers = #tpu.dot_dimension_numbers<[1], [0], [0], [1], [0, 0, 1, 1], [], []>} : vector<16x256xbf16>, vector<256x512xbf16>, vector<16x512xf32> -> vector<16x512xf32>
    %c0_18 = arith.constant 0 : index
    %c0_19 = arith.constant 0 : index
    %32 = vector.load %arg4[%c0_18, %c0_19] : memref<1x512xf32, #tpu.memory_space<vmem>>, vector<1x512xf32>
    %33 = vector.broadcast %32 : vector<1x512xf32> to vector<16x512xf32>
    %34 = arith.addf %31, %33 : vector<16x512xf32>
    %cst_20 = arith.constant 0.000000e+00 : f32
    %35 = vector.broadcast %cst_20 : f32 to vector<2x128xf32>
    %cst_21 = arith.constant 0.000000e+00 : f32
    %36 = vector.broadcast %cst_21 : f32 to vector<2x128xf32>
    %37 = vector.extract_strided_slice %34 {offsets = [0, 0], sizes = [2, 512], strides = [1, 1]} : vector<16x512xf32> to vector<2x512xf32>
    %38 = arith.truncf %35 : vector<2x128xf32> to vector<2x128xbf16>
    %cst_22 = arith.constant dense<0.000000e+00> : vector<2x512xf32>
    %39 = tpu.matmul %38, %29, %cst_22 {dimension_numbers = #tpu.dot_dimension_numbers<[1], [0], [0], [1], [0, 0, 1, 1], [], []>} : vector<2x128xbf16>, vector<128x512xbf16>, vector<2x512xf32> -> vector<2x512xf32>
    %40 = arith.addf %37, %39 : vector<2x512xf32>
    %41 = vector.extract_strided_slice %40 {offsets = [0, 0], sizes = [2, 384], strides = [1, 1]} : vector<2x512xf32> to vector<2x384xf32>
    %cst_23 = arith.constant 5.000000e-01 : f32
    %42 = vector.broadcast %cst_23 : f32 to vector<2x384xf32>
    %43 = arith.mulf %42, %41 : vector<2x384xf32>
    %44 = math.tanh %43 : vector<2x384xf32>
    %cst_24 = arith.constant 1.000000e+00 : f32
    %45 = vector.broadcast %cst_24 : f32 to vector<2x384xf32>
    %46 = arith.addf %44, %45 : vector<2x384xf32>
    %cst_25 = arith.constant 5.000000e-01 : f32
    %47 = vector.broadcast %cst_25 : f32 to vector<2x384xf32>
    %48 = arith.mulf %47, %46 : vector<2x384xf32>
    %49 = vector.extract_strided_slice %40 {offsets = [0, 384], sizes = [2, 128], strides = [1, 1]} : vector<2x512xf32> to vector<2x128xf32>
    %50 = math.tanh %49 : vector<2x128xf32>
    %51 = vector.extract_strided_slice %48 {offsets = [0, 128], sizes = [2, 128], strides = [1, 1]} : vector<2x384xf32> to vector<2x128xf32>
    %52 = arith.mulf %51, %36 : vector<2x128xf32>
    %53 = vector.extract_strided_slice %48 {offsets = [0, 0], sizes = [2, 128], strides = [1, 1]} : vector<2x384xf32> to vector<2x128xf32>
    %54 = arith.mulf %53, %50 : vector<2x128xf32>
    %55 = arith.addf %52, %54 : vector<2x128xf32>
    %56 = vector.extract_strided_slice %48 {offsets = [0, 256], sizes = [2, 128], strides = [1, 1]} : vector<2x384xf32> to vector<2x128xf32>
    %57 = math.tanh %55 : vector<2x128xf32>
    %58 = arith.mulf %56, %57 : vector<2x128xf32>
    %c0_26 = arith.constant 0 : index
    %c0_27 = arith.constant 0 : index
    %59 = vector.load %arg5[%c0_26, %c0_27] : memref<16x128xf32, #tpu.memory_space<vmem>>, vector<2x128xf32>
    tpu.vector_store %arg5[%c0_26, %c0_27], %58 {strides = array<i32>} : memref<16x128xf32, #tpu.memory_space<vmem>>, vector<2x128xf32>,
    %60 = vector.extract_strided_slice %34 {offsets = [2, 0], sizes = [2, 512], strides = [1, 1]} : vector<16x512xf32> to vector<2x512xf32>
    %61 = arith.truncf %58 : vector<2x128xf32> to vector<2x128xbf16>
    %cst_28 = arith.constant dense<0.000000e+00> : vector<2x512xf32>
    %62 = tpu.matmul %61, %29, %cst_28 {dimension_numbers = #tpu.dot_dimension_numbers<[1], [0], [0], [1], [0, 0, 1, 1], [], []>} : vector<2x128xbf16>, vector<128x512xbf16>, vector<2x512xf32> -> vector<2x512xf32>
    %63 = arith.addf %60, %62 : vector<2x512xf32>
    %64 = vector.extract_strided_slice %63 {offsets = [0, 0], sizes = [2, 384], strides = [1, 1]} : vector<2x512xf32> to vector<2x384xf32>
    %cst_29 = arith.constant 5.000000e-01 : f32
    %65 = vector.broadcast %cst_29 : f32 to vector<2x384xf32>
    %66 = arith.mulf %65, %64 : vector<2x384xf32>
    %67 = math.tanh %66 : vector<2x384xf32>
    %cst_30 = arith.constant 1.000000e+00 : f32
    %68 = vector.broadcast %cst_30 : f32 to vector<2x384xf32>
    %69 = arith.addf %67, %68 : vector<2x384xf32>
    %cst_31 = arith.constant 5.000000e-01 : f32
    %70 = vector.broadcast %cst_31 : f32 to vector<2x384xf32>
    %71 = arith.mulf %70, %69 : vector<2x384xf32>
    %72 = vector.extract_strided_slice %63 {offsets = [0, 384], sizes = [2, 128], strides = [1, 1]} : vector<2x512xf32> to vector<2x128xf32>
    %73 = math.tanh %72 : vector<2x128xf32>
    %74 = vector.extract_strided_slice %71 {offsets = [0, 128], sizes = [2, 128], strides = [1, 1]} : vector<2x384xf32> to vector<2x128xf32>
    %75 = arith.mulf %74, %55 : vector<2x128xf32>
    %76 = vector.extract_strided_slice %71 {offsets = [0, 0], sizes = [2, 128], strides = [1, 1]} : vector<2x384xf32> to vector<2x128xf32>
    %77 = arith.mulf %76, %73 : vector<2x128xf32>
    %78 = arith.addf %75, %77 : vector<2x128xf32>
    %79 = vector.extract_strided_slice %71 {offsets = [0, 256], sizes = [2, 128], strides = [1, 1]} : vector<2x384xf32> to vector<2x128xf32>
    %80 = math.tanh %78 : vector<2x128xf32>
    %81 = arith.mulf %79, %80 : vector<2x128xf32>
    %c2_32 = arith.constant 2 : index
    %c0_33 = arith.constant 0 : index
    %82 = vector.load %arg5[%c2_32, %c0_33] : memref<16x128xf32, #tpu.memory_space<vmem>>, vector<2x128xf32>
    tpu.vector_store %arg5[%c2_32, %c0_33], %81 {strides = array<i32>} : memref<16x128xf32, #tpu.memory_space<vmem>>, vector<2x128xf32>,
    %83 = vector.extract_strided_slice %34 {offsets = [4, 0], sizes = [2, 512], strides = [1, 1]} : vector<16x512xf32> to vector<2x512xf32>
    %84 = arith.truncf %81 : vector<2x128xf32> to vector<2x128xbf16>
    %cst_34 = arith.constant dense<0.000000e+00> : vector<2x512xf32>
    %85 = tpu.matmul %84, %29, %cst_34 {dimension_numbers = #tpu.dot_dimension_numbers<[1], [0], [0], [1], [0, 0, 1, 1], [], []>} : vector<2x128xbf16>, vector<128x512xbf16>, vector<2x512xf32> -> vector<2x512xf32>
    %86 = arith.addf %83, %85 : vector<2x512xf32>
    %87 = vector.extract_strided_slice %86 {offsets = [0, 0], sizes = [2, 384], strides = [1, 1]} : vector<2x512xf32> to vector<2x384xf32>
    %cst_35 = arith.constant 5.000000e-01 : f32
    %88 = vector.broadcast %cst_35 : f32 to vector<2x384xf32>
    %89 = arith.mulf %88, %87 : vector<2x384xf32>
    %90 = math.tanh %89 : vector<2x384xf32>
    %cst_36 = arith.constant 1.000000e+00 : f32
    %91 = vector.broadcast %cst_36 : f32 to vector<2x384xf32>
    %92 = arith.addf %90, %91 : vector<2x384xf32>
    %cst_37 = arith.constant 5.000000e-01 : f32
    %93 = vector.broadcast %cst_37 : f32 to vector<2x384xf32>
    %94 = arith.mulf %93, %92 : vector<2x384xf32>
    %95 = vector.extract_strided_slice %86 {offsets = [0, 384], sizes = [2, 128], strides = [1, 1]} : vector<2x512xf32> to vector<2x128xf32>
    %96 = math.tanh %95 : vector<2x128xf32>
    %97 = vector.extract_strided_slice %94 {offsets = [0, 128], sizes = [2, 128], strides = [1, 1]} : vector<2x384xf32> to vector<2x128xf32>
    %98 = arith.mulf %97, %78 : vector<2x128xf32>
    %99 = vector.extract_strided_slice %94 {offsets = [0, 0], sizes = [2, 128], strides = [1, 1]} : vector<2x384xf32> to vector<2x128xf32>
    %100 = arith.mulf %99, %96 : vector<2x128xf32>
    %101 = arith.addf %98, %100 : vector<2x128xf32>
    %102 = vector.extract_strided_slice %94 {offsets = [0, 256], sizes = [2, 128], strides = [1, 1]} : vector<2x384xf32> to vector<2x128xf32>
    %103 = math.tanh %101 : vector<2x128xf32>
    %104 = arith.mulf %102, %103 : vector<2x128xf32>
    %c4 = arith.constant 4 : index
    %c0_38 = arith.constant 0 : index
    %105 = vector.load %arg5[%c4, %c0_38] : memref<16x128xf32, #tpu.memory_space<vmem>>, vector<2x128xf32>
    tpu.vector_store %arg5[%c4, %c0_38], %104 {strides = array<i32>} : memref<16x128xf32, #tpu.memory_space<vmem>>, vector<2x128xf32>,
    %106 = vector.extract_strided_slice %34 {offsets = [6, 0], sizes = [2, 512], strides = [1, 1]} : vector<16x512xf32> to vector<2x512xf32>
    %107 = arith.truncf %104 : vector<2x128xf32> to vector<2x128xbf16>
    %cst_39 = arith.constant dense<0.000000e+00> : vector<2x512xf32>
    %108 = tpu.matmul %107, %29, %cst_39 {dimension_numbers = #tpu.dot_dimension_numbers<[1], [0], [0], [1], [0, 0, 1, 1], [], []>} : vector<2x128xbf16>, vector<128x512xbf16>, vector<2x512xf32> -> vector<2x512xf32>
    %109 = arith.addf %106, %108 : vector<2x512xf32>
    %110 = vector.extract_strided_slice %109 {offsets = [0, 0], sizes = [2, 384], strides = [1, 1]} : vector<2x512xf32> to vector<2x384xf32>
    %cst_40 = arith.constant 5.000000e-01 : f32
    %111 = vector.broadcast %cst_40 : f32 to vector<2x384xf32>
    %112 = arith.mulf %111, %110 : vector<2x384xf32>
    %113 = math.tanh %112 : vector<2x384xf32>
    %cst_41 = arith.constant 1.000000e+00 : f32
    %114 = vector.broadcast %cst_41 : f32 to vector<2x384xf32>
    %115 = arith.addf %113, %114 : vector<2x384xf32>
    %cst_42 = arith.constant 5.000000e-01 : f32
    %116 = vector.broadcast %cst_42 : f32 to vector<2x384xf32>
    %117 = arith.mulf %116, %115 : vector<2x384xf32>
    %118 = vector.extract_strided_slice %109 {offsets = [0, 384], sizes = [2, 128], strides = [1, 1]} : vector<2x512xf32> to vector<2x128xf32>
    %119 = math.tanh %118 : vector<2x128xf32>
    %120 = vector.extract_strided_slice %117 {offsets = [0, 128], sizes = [2, 128], strides = [1, 1]} : vector<2x384xf32> to vector<2x128xf32>
    %121 = arith.mulf %120, %101 : vector<2x128xf32>
    %122 = vector.extract_strided_slice %117 {offsets = [0, 0], sizes = [2, 128], strides = [1, 1]} : vector<2x384xf32> to vector<2x128xf32>
    %123 = arith.mulf %122, %119 : vector<2x128xf32>
    %124 = arith.addf %121, %123 : vector<2x128xf32>
    %125 = vector.extract_strided_slice %117 {offsets = [0, 256], sizes = [2, 128], strides = [1, 1]} : vector<2x384xf32> to vector<2x128xf32>
    %126 = math.tanh %124 : vector<2x128xf32>
    %127 = arith.mulf %125, %126 : vector<2x128xf32>
    %c6 = arith.constant 6 : index
    %c0_43 = arith.constant 0 : index
    %128 = vector.load %arg5[%c6, %c0_43] : memref<16x128xf32, #tpu.memory_space<vmem>>, vector<2x128xf32>
    tpu.vector_store %arg5[%c6, %c0_43], %127 {strides = array<i32>} : memref<16x128xf32, #tpu.memory_space<vmem>>, vector<2x128xf32>,
    %129 = vector.extract_strided_slice %34 {offsets = [8, 0], sizes = [2, 512], strides = [1, 1]} : vector<16x512xf32> to vector<2x512xf32>
    %130 = arith.truncf %127 : vector<2x128xf32> to vector<2x128xbf16>
    %cst_44 = arith.constant dense<0.000000e+00> : vector<2x512xf32>
    %131 = tpu.matmul %130, %29, %cst_44 {dimension_numbers = #tpu.dot_dimension_numbers<[1], [0], [0], [1], [0, 0, 1, 1], [], []>} : vector<2x128xbf16>, vector<128x512xbf16>, vector<2x512xf32> -> vector<2x512xf32>
    %132 = arith.addf %129, %131 : vector<2x512xf32>
    %133 = vector.extract_strided_slice %132 {offsets = [0, 0], sizes = [2, 384], strides = [1, 1]} : vector<2x512xf32> to vector<2x384xf32>
    %cst_45 = arith.constant 5.000000e-01 : f32
    %134 = vector.broadcast %cst_45 : f32 to vector<2x384xf32>
    %135 = arith.mulf %134, %133 : vector<2x384xf32>
    %136 = math.tanh %135 : vector<2x384xf32>
    %cst_46 = arith.constant 1.000000e+00 : f32
    %137 = vector.broadcast %cst_46 : f32 to vector<2x384xf32>
    %138 = arith.addf %136, %137 : vector<2x384xf32>
    %cst_47 = arith.constant 5.000000e-01 : f32
    %139 = vector.broadcast %cst_47 : f32 to vector<2x384xf32>
    %140 = arith.mulf %139, %138 : vector<2x384xf32>
    %141 = vector.extract_strided_slice %132 {offsets = [0, 384], sizes = [2, 128], strides = [1, 1]} : vector<2x512xf32> to vector<2x128xf32>
    %142 = math.tanh %141 : vector<2x128xf32>
    %143 = vector.extract_strided_slice %140 {offsets = [0, 128], sizes = [2, 128], strides = [1, 1]} : vector<2x384xf32> to vector<2x128xf32>
    %144 = arith.mulf %143, %124 : vector<2x128xf32>
    %145 = vector.extract_strided_slice %140 {offsets = [0, 0], sizes = [2, 128], strides = [1, 1]} : vector<2x384xf32> to vector<2x128xf32>
    %146 = arith.mulf %145, %142 : vector<2x128xf32>
    %147 = arith.addf %144, %146 : vector<2x128xf32>
    %148 = vector.extract_strided_slice %140 {offsets = [0, 256], sizes = [2, 128], strides = [1, 1]} : vector<2x384xf32> to vector<2x128xf32>
    %149 = math.tanh %147 : vector<2x128xf32>
    %150 = arith.mulf %148, %149 : vector<2x128xf32>
    %c8 = arith.constant 8 : index
    %c0_48 = arith.constant 0 : index
    %151 = vector.load %arg5[%c8, %c0_48] : memref<16x128xf32, #tpu.memory_space<vmem>>, vector<2x128xf32>
    tpu.vector_store %arg5[%c8, %c0_48], %150 {strides = array<i32>} : memref<16x128xf32, #tpu.memory_space<vmem>>, vector<2x128xf32>,
    %152 = vector.extract_strided_slice %34 {offsets = [10, 0], sizes = [2, 512], strides = [1, 1]} : vector<16x512xf32> to vector<2x512xf32>
    %153 = arith.truncf %150 : vector<2x128xf32> to vector<2x128xbf16>
    %cst_49 = arith.constant dense<0.000000e+00> : vector<2x512xf32>
    %154 = tpu.matmul %153, %29, %cst_49 {dimension_numbers = #tpu.dot_dimension_numbers<[1], [0], [0], [1], [0, 0, 1, 1], [], []>} : vector<2x128xbf16>, vector<128x512xbf16>, vector<2x512xf32> -> vector<2x512xf32>
    %155 = arith.addf %152, %154 : vector<2x512xf32>
    %156 = vector.extract_strided_slice %155 {offsets = [0, 0], sizes = [2, 384], strides = [1, 1]} : vector<2x512xf32> to vector<2x384xf32>
    %cst_50 = arith.constant 5.000000e-01 : f32
    %157 = vector.broadcast %cst_50 : f32 to vector<2x384xf32>
    %158 = arith.mulf %157, %156 : vector<2x384xf32>
    %159 = math.tanh %158 : vector<2x384xf32>
    %cst_51 = arith.constant 1.000000e+00 : f32
    %160 = vector.broadcast %cst_51 : f32 to vector<2x384xf32>
    %161 = arith.addf %159, %160 : vector<2x384xf32>
    %cst_52 = arith.constant 5.000000e-01 : f32
    %162 = vector.broadcast %cst_52 : f32 to vector<2x384xf32>
    %163 = arith.mulf %162, %161 : vector<2x384xf32>
    %164 = vector.extract_strided_slice %155 {offsets = [0, 384], sizes = [2, 128], strides = [1, 1]} : vector<2x512xf32> to vector<2x128xf32>
    %165 = math.tanh %164 : vector<2x128xf32>
    %166 = vector.extract_strided_slice %163 {offsets = [0, 128], sizes = [2, 128], strides = [1, 1]} : vector<2x384xf32> to vector<2x128xf32>
    %167 = arith.mulf %166, %147 : vector<2x128xf32>
    %168 = vector.extract_strided_slice %163 {offsets = [0, 0], sizes = [2, 128], strides = [1, 1]} : vector<2x384xf32> to vector<2x128xf32>
    %169 = arith.mulf %168, %165 : vector<2x128xf32>
    %170 = arith.addf %167, %169 : vector<2x128xf32>
    %171 = vector.extract_strided_slice %163 {offsets = [0, 256], sizes = [2, 128], strides = [1, 1]} : vector<2x384xf32> to vector<2x128xf32>
    %172 = math.tanh %170 : vector<2x128xf32>
    %173 = arith.mulf %171, %172 : vector<2x128xf32>
    %c10 = arith.constant 10 : index
    %c0_53 = arith.constant 0 : index
    %174 = vector.load %arg5[%c10, %c0_53] : memref<16x128xf32, #tpu.memory_space<vmem>>, vector<2x128xf32>
    tpu.vector_store %arg5[%c10, %c0_53], %173 {strides = array<i32>} : memref<16x128xf32, #tpu.memory_space<vmem>>, vector<2x128xf32>,
    %175 = vector.extract_strided_slice %34 {offsets = [12, 0], sizes = [2, 512], strides = [1, 1]} : vector<16x512xf32> to vector<2x512xf32>
    %176 = arith.truncf %173 : vector<2x128xf32> to vector<2x128xbf16>
    %cst_54 = arith.constant dense<0.000000e+00> : vector<2x512xf32>
    %177 = tpu.matmul %176, %29, %cst_54 {dimension_numbers = #tpu.dot_dimension_numbers<[1], [0], [0], [1], [0, 0, 1, 1], [], []>} : vector<2x128xbf16>, vector<128x512xbf16>, vector<2x512xf32> -> vector<2x512xf32>
    %178 = arith.addf %175, %177 : vector<2x512xf32>
    %179 = vector.extract_strided_slice %178 {offsets = [0, 0], sizes = [2, 384], strides = [1, 1]} : vector<2x512xf32> to vector<2x384xf32>
    %cst_55 = arith.constant 5.000000e-01 : f32
    %180 = vector.broadcast %cst_55 : f32 to vector<2x384xf32>
    %181 = arith.mulf %180, %179 : vector<2x384xf32>
    %182 = math.tanh %181 : vector<2x384xf32>
    %cst_56 = arith.constant 1.000000e+00 : f32
    %183 = vector.broadcast %cst_56 : f32 to vector<2x384xf32>
    %184 = arith.addf %182, %183 : vector<2x384xf32>
    %cst_57 = arith.constant 5.000000e-01 : f32
    %185 = vector.broadcast %cst_57 : f32 to vector<2x384xf32>
    %186 = arith.mulf %185, %184 : vector<2x384xf32>
    %187 = vector.extract_strided_slice %178 {offsets = [0, 384], sizes = [2, 128], strides = [1, 1]} : vector<2x512xf32> to vector<2x128xf32>
    %188 = math.tanh %187 : vector<2x128xf32>
    %189 = vector.extract_strided_slice %186 {offsets = [0, 128], sizes = [2, 128], strides = [1, 1]} : vector<2x384xf32> to vector<2x128xf32>
    %190 = arith.mulf %189, %170 : vector<2x128xf32>
    %191 = vector.extract_strided_slice %186 {offsets = [0, 0], sizes = [2, 128], strides = [1, 1]} : vector<2x384xf32> to vector<2x128xf32>
    %192 = arith.mulf %191, %188 : vector<2x128xf32>
    %193 = arith.addf %190, %192 : vector<2x128xf32>
    %194 = vector.extract_strided_slice %186 {offsets = [0, 256], sizes = [2, 128], strides = [1, 1]} : vector<2x384xf32> to vector<2x128xf32>
    %195 = math.tanh %193 : vector<2x128xf32>
    %196 = arith.mulf %194, %195 : vector<2x128xf32>
    %c12 = arith.constant 12 : index
    %c0_58 = arith.constant 0 : index
    %197 = vector.load %arg5[%c12, %c0_58] : memref<16x128xf32, #tpu.memory_space<vmem>>, vector<2x128xf32>
    tpu.vector_store %arg5[%c12, %c0_58], %196 {strides = array<i32>} : memref<16x128xf32, #tpu.memory_space<vmem>>, vector<2x128xf32>,
    %198 = vector.extract_strided_slice %34 {offsets = [14, 0], sizes = [2, 512], strides = [1, 1]} : vector<16x512xf32> to vector<2x512xf32>
    %199 = arith.truncf %196 : vector<2x128xf32> to vector<2x128xbf16>
    %cst_59 = arith.constant dense<0.000000e+00> : vector<2x512xf32>
    %200 = tpu.matmul %199, %29, %cst_59 {dimension_numbers = #tpu.dot_dimension_numbers<[1], [0], [0], [1], [0, 0, 1, 1], [], []>} : vector<2x128xbf16>, vector<128x512xbf16>, vector<2x512xf32> -> vector<2x512xf32>
    %201 = arith.addf %198, %200 : vector<2x512xf32>
    %202 = vector.extract_strided_slice %201 {offsets = [0, 0], sizes = [2, 384], strides = [1, 1]} : vector<2x512xf32> to vector<2x384xf32>
    %cst_60 = arith.constant 5.000000e-01 : f32
    %203 = vector.broadcast %cst_60 : f32 to vector<2x384xf32>
    %204 = arith.mulf %203, %202 : vector<2x384xf32>
    %205 = math.tanh %204 : vector<2x384xf32>
    %cst_61 = arith.constant 1.000000e+00 : f32
    %206 = vector.broadcast %cst_61 : f32 to vector<2x384xf32>
    %207 = arith.addf %205, %206 : vector<2x384xf32>
    %cst_62 = arith.constant 5.000000e-01 : f32
    %208 = vector.broadcast %cst_62 : f32 to vector<2x384xf32>
    %209 = arith.mulf %208, %207 : vector<2x384xf32>
    %210 = vector.extract_strided_slice %201 {offsets = [0, 384], sizes = [2, 128], strides = [1, 1]} : vector<2x512xf32> to vector<2x128xf32>
    %211 = math.tanh %210 : vector<2x128xf32>
    %212 = vector.extract_strided_slice %209 {offsets = [0, 128], sizes = [2, 128], strides = [1, 1]} : vector<2x384xf32> to vector<2x128xf32>
    %213 = arith.mulf %212, %193 : vector<2x128xf32>
    %214 = vector.extract_strided_slice %209 {offsets = [0, 0], sizes = [2, 128], strides = [1, 1]} : vector<2x384xf32> to vector<2x128xf32>
    %215 = arith.mulf %214, %211 : vector<2x128xf32>
    %216 = arith.addf %213, %215 : vector<2x128xf32>
    %217 = vector.extract_strided_slice %209 {offsets = [0, 256], sizes = [2, 128], strides = [1, 1]} : vector<2x384xf32> to vector<2x128xf32>
    %218 = math.tanh %216 : vector<2x128xf32>
    %219 = arith.mulf %217, %218 : vector<2x128xf32>
    %c14 = arith.constant 14 : index
    %c0_63 = arith.constant 0 : index
    %220 = vector.load %arg5[%c14, %c0_63] : memref<16x128xf32, #tpu.memory_space<vmem>>, vector<2x128xf32>
    tpu.vector_store %arg5[%c14, %c0_63], %219 {strides = array<i32>} : memref<16x128xf32, #tpu.memory_space<vmem>>, vector<2x128xf32>,
    return
  }
}

</mosaic_0001>

<bundles_post_ra>
// kernel: reverse
= control target key start
LH: loop header
LB: loop body
LE: loop exit
PB: predicated region body
PF: predicated region fallthrough
CT: control target
= control target key end

     0   :  { %s104_s0 = inlined_call_operand.vmem [shape: f32[8,2,32], index: 0, kind: input, shape index: {}]   ;;  %s105_s1 = inlined_call_operand.vmem [shape: f32[8,2,32], index: 1, kind: output, shape index: {}]  }
   0x1   :  { %v32_v0 = vld [vmem:[%s104_s0 + $0xe] sm:$0x3]  ;;  %v33_v1 = vld [vmem:[%s104_s0 + $0xc] sm:$0x3]  ;;  %v35_v2 = vld [vmem:[%s104_s0 + $0xa] sm:$0x3] }
   0x2   :  { %4 = vst [vmem:[%s105_s1] sm:$0x3] %v32_v0  ;;  %34 = vst [vmem:[%s105_s1 + $0x2] sm:$0x3] %v33_v1  ;;  %v37_v3 = vld [vmem:[%s104_s0 + $0x8] sm:$0x3] }
   0x3   :  { %36 = vst [vmem:[%s105_s1 + $0x4] sm:$0x3] %v35_v2  ;;  %v39_v4 = vld [vmem:[%s104_s0 + $0x6] sm:$0x3]  ;;  %v41_v5 = vld [vmem:[%s104_s0 + $0x4] sm:$0x3] }
   0x4   :  { %38 = vst [vmem:[%s105_s1 + $0x6] sm:$0x3] %v37_v3  ;;  %40 = vst [vmem:[%s105_s1 + $0x8] sm:$0x3] %v39_v4  ;;  %v43_v6 = vld [vmem:[%s104_s0 + $0x2] sm:$0x3] }
   0x5   :  { %42 = vst [vmem:[%s105_s1 + $0xa] sm:$0x3] %v41_v5  ;;  %v29_v7 = vld [vmem:[%s104_s0] sm:$0x3]  ;;  %44 = vst [vmem:[%s105_s1 + $0xc] sm:$0x3] %v43_v6 }
   0x6   :  { %45 = vst [vmem:[%s105_s1 + $0xe] sm:$0x3] %v29_v7 }

// kernel: encoder_forward.1
= control target key start
LH: loop header
LB: loop body
LE: loop exit
PB: predicated region body
PF: predicated region fallthrough
CT: control target
= control target key end

     0   :  { %vm52_vm0 = vcmask 392192   ;;  %v2492_v21 = vmov 0   ;;  %vm199_vm1 = vcmask 785408   ;;  %vm368_vm2 = vcmask 523264   ;;  %s3414_s1 = inlined_call_operand.vmem [shape: bf16[336,192], index: 1, kind: input, shape index: {}]   ;;  %s3415_s0 = inlined_call_operand.vmem [shape: f32[32,48], index: 0, kind: input, shape index: {}]   ;;  %s3416_s2 = inlined_call_operand.vmem [shape: f32[8,192], index: 2, kind: input, shape index: {}]   ;;  %s3417_s3 = inlined_call_operand.vmem [shape: bf16[384,512], index: 3, kind: input, shape index: {}]   ;;  %s3418_s4 = inlined_call_operand.vmem [shape: f32[1,512], index: 4, kind: input, shape index: {}]   ;;  %s3419_s5 = inlined_call_operand.vmem [shape: f32[16,128], index: 5, kind: output, shape index: {}]  }
   0x1   :  { %v2219_v0 = vld [vmem:[%s3414_s1] ss:$8 sps:$4 sm:$0xff]   ;;  %v2220_v1 = vld [vmem:[%s3414_s1 + $0x10] ss:$8 sps:$4 sm:$0xff]   ;;  %v2222_v6 = vld [vmem:[%s3414_s1 + $0x34] ss:$8 sps:$4 sm:$0xff]   ;;  %238 = vmatprep.mubr.bf16.mxu0 %v2492_v21 }
   0x2   :  { %2208 = vmatprep.subr.bf16.mxu1 %v2219_v0  ;;  %v21_v2 = vld [vmem:[%s3415_s0] sm:$0xff]  ;;  %v22_v3 = vld [vmem:[%s3415_s0 + $0x8] sm:$0xff]  ;;  %v2224_v7 = vld [vmem:[%s3414_s1 + $0x30] ss:$8 sps:$4 sm:$0xff]   ;;  %206 = vmatprep.subr.bf16.mxu0 %v2222_v6 }
   0x3   :  { %2209 = vmatpush3.bf16.msra.mxu1 %v2219_v0  ;;  %v2221_v4 = vld [vmem:[%s3414_s1 + $0x20] ss:$8 sps:$4 sm:$0xff]   ;;  %v32_v5 = vpack.c.bf16 %v22_v3, %v21_v2  ;;  %v23_v8 = vld [vmem:[%s3415_s0 + $0x10] sm:$0xff]  ;;  %v2225_v9 = vld [vmem:[%s3414_s1 + $0x44] ss:$8 sps:$4 sm:$0xff]   ;;  %207 = vmatpush1.bf16.msra.mxu0 %v2224_v7 }
   0x4   :  { %2210 = vmatprep.subr.bf16.mxu1 %v2220_v1  ;;  %v24_v10 = vld [vmem:[%s3415_s0 + $0x18] sm:$0xff]  ;;  %v2227_v11 = vld [vmem:[%s3414_s1 + $0x40] ss:$8 sps:$4 sm:$0xff]   ;;  %208 = vmatprep.subr.bf16.mxu0 %v2225_v9  ;;  %v2231_v15 = vld [vmem:[%s3414_s1 + $0x64] ss:$8 sps:$4 sm:$0xff]  }
   0x5   :  { %2214 = vmatprep.mubr.msk.bf16.mxu1 %vm52_vm0, %v32_v5  ;;  %v2228_v12 = vld [vmem:[%s3414_s1 + $0x54] ss:$8 sps:$4 sm:$0xff]   ;;  %v33_v13 = vpack.c.bf16 %v24_v10, %v23_v8  ;;  %v2230_v14 = vld [vmem:[%s3414_s1 + $0x50] ss:$8 sps:$4 sm:$0xff]   ;;  %v2233_v16 = vld [vmem:[%s3414_s1 + $0x60] ss:$8 sps:$4 sm:$0xff]   ;;  %v129_v10 = vlaneseq }
   0x6   :  { %v2234_v17 = vld [vmem:[%s3414_s1 + $0x74] ss:$8 sps:$4 sm:$0xff]   ;;  %v2236_v18 = vld [vmem:[%s3414_s1 + $0x70] ss:$8 sps:$4 sm:$0xff]   ;;  %v2237_v19 = vld [vmem:[%s3414_s1 + $0x84] ss:$8 sps:$4 sm:$0xff]  }
   0x7   :  { %2211 = vmatpush3.bf16.msra.mxu1 %v2220_v1  ;;  %209 = vmatpush1.bf16.msra.mxu0 %v2227_v11  ;;  %v2239_v20 = vld [vmem:[%s3414_s1 + $0x80] ss:$8 sps:$4 sm:$0xff]   ;;  %v2240_v36 = vld [vmem:[%s3414_s1 + $0x90] ss:$8 sps:$4 sm:$0xff]   ;;  %v2254_v50 = vld [vmem:[%s3417_s3 + $0x4] ss:$16 sps:$4 sm:$0xff]  }
   0x8   :  { %2212 = vmatprep.subr.bf16.mxu1 %v2221_v4  ;;  %210 = vmatprep.subr.bf16.mxu0 %v2228_v12  ;;  %v31_v22 = vld [vmem:[%s3416_s2] ss:$0 sm:$0xff]  ;;  %v2242_v39 = vld [vmem:[%s3414_s1 + $0xb0] ss:$8 sps:$4 sm:$0xff]   ;;  %v2257_v51 = vld [vmem:[%s3417_s3 + $0xc] ss:$16 sps:$4 sm:$0xff]  }
   0x9   :  { %v2241_v38 = vld [vmem:[%s3414_s1 + $0xa0] ss:$8 sps:$4 sm:$0xff]   ;;  %v2244_v41 = vld [vmem:[%s3414_s1 + $0xd0] ss:$8 sps:$4 sm:$0xff]   ;;  %v2260_v52 = vld [vmem:[%s3417_s3 + $0x24] ss:$16 sps:$4 sm:$0xff]  }
   0xa   :  { %v2243_v40 = vld [vmem:[%s3414_s1 + $0xc0] ss:$8 sps:$4 sm:$0xff]   ;;  %v2246_v43 = vld [vmem:[%s3414_s1 + $0xf0] ss:$8 sps:$4 sm:$0xff]   ;;  %v2266_v54 = vld [vmem:[%s3417_s3 + $0x44] ss:$16 sps:$4 sm:$0xff]  }
   0xb   :  { %2213 = vmatpush3.bf16.msra.mxu1 %v2221_v4  ;;  %211 = vmatpush1.bf16.msra.mxu0 %v2230_v14  ;;  %v2245_v42 = vld [vmem:[%s3414_s1 + $0xe0] ss:$8 sps:$4 sm:$0xff]   ;;  %v2248_v45 = vld [vmem:[%s3414_s1 + $0x110] ss:$8 sps:$4 sm:$0xff]   ;;  %v2272_v56 = vld [vmem:[%s3417_s3 + $0x64] ss:$16 sps:$4 sm:$0xff]  }
   0xc   :  { %212 = vmatprep.subr.bf16.mxu0 %v2231_v15  ;;  %v2247_v44 = vld [vmem:[%s3414_s1 + $0x100] ss:$8 sps:$4 sm:$0xff]   ;;  %v2250_v47 = vld [vmem:[%s3414_s1 + $0x130] ss:$8 sps:$4 sm:$0xff]   ;;  %868 = vmatprep.subr.bf16.mxu1 %v2254_v50  ;;  %v2278_v58 = vld [vmem:[%s3417_s3 + $0x84] ss:$16 sps:$4 sm:$0xff]  }
   0xd   :  { %v2249_v46 = vld [vmem:[%s3414_s1 + $0x120] ss:$8 sps:$4 sm:$0xff]   ;;  %v2284_v60 = vld [vmem:[%s3417_s3 + $0xa4] ss:$16 sps:$4 sm:$0xff]   ;;  %v2710_v11 = vshrl.u32 %v129_v10, 7 }
   0xe   :  { %2215 = vmatmul.mubr.msk.bf16.vlgmr.msra.gmra.mrb[0].mxu1 %vm52_vm0, %v33_v13  ;;  %v2251_v48 = vld [vmem:[%s3414_s1 + $0x140] ss:$8 sps:$4 sm:$0xff]   ;;  %v2290_v62 = vld [vmem:[%s3417_s3 + $0xc4] ss:$16 sps:$4 sm:$0xff]  }
   0xf   :  { %213 = vmatpush1.bf16.msra.mxu0 %v2233_v16  ;;  %v2252_v49 = vld [vmem:[%s3417_s3] ss:$16 sps:$4 sm:$0xff]   ;;  %v2296_v0 = vld [vmem:[%s3417_s3 + $0xe4] ss:$16 sps:$4 sm:$0xff]   ;;  %v131_v12 = vsub.s32 0, %v2710_v11  ;;  %v135_v14 = vsub.s32 1, %v2710_v11 }
  0x10   :  { %214 = vmatprep.subr.bf16.mxu0 %v2234_v17  ;;  %869 = vmatpush1.bf16.msra.mxu1 %v2252_v49  ;;  %v2258_v53 = vld [vmem:[%s3417_s3 + $0x20] ss:$16 sps:$4 sm:$0xff]   ;;  %v2302_v2 = vld [vmem:[%s3417_s3 + $0x104] ss:$16 sps:$4 sm:$0xff]   ;;  %v2267_v50 = vld [vmem:[%s3417_s3 + $0x48] ss:$16 sps:$4 sm:$0xff]  }
  0x11   :  { %870 = vmatprep.subr.bf16.mxu1 %v2260_v52  ;;  %v2264_v55 = vld [vmem:[%s3417_s3 + $0x40] ss:$16 sps:$4 sm:$0xff]   ;;  %v2308_v4 = vld [vmem:[%s3417_s3 + $0x124] ss:$16 sps:$4 sm:$0xff]   ;;  %v2273_v52 = vld [vmem:[%s3417_s3 + $0x68] ss:$16 sps:$4 sm:$0xff]  }
  0x12   :  { %v2270_v57 = vld [vmem:[%s3417_s3 + $0x60] ss:$16 sps:$4 sm:$0xff]   ;;  %v2314_v6 = vld [vmem:[%s3417_s3 + $0x144] ss:$16 sps:$4 sm:$0xff]  }
  0x13   :  { %215 = vmatpush1.bf16.msra.mxu0 %v2236_v18  ;;  %v2276_v59 = vld [vmem:[%s3417_s3 + $0x80] ss:$16 sps:$4 sm:$0xff]   ;;  %v2320_v8 = vld [vmem:[%s3417_s3 + $0x164] ss:$16 sps:$4 sm:$0xff]  }
  0x14   :  { %216 = vmatprep.subr.bf16.mxu0 %v2237_v19  ;;  %871 = vmatpush1.bf16.msra.mxu1 %v2258_v53  ;;  %v2282_v61 = vld [vmem:[%s3417_s3 + $0xa0] ss:$16 sps:$4 sm:$0xff]   ;;  %v2281_v53 = vld [vmem:[%s3417_s3 + $0x8c] ss:$16 sps:$4 sm:$0xff]  }
  0x15   :  { %872 = vmatprep.subr.bf16.mxu1 %v2266_v54  ;;  %v2288_v63 = vld [vmem:[%s3417_s3 + $0xc0] ss:$16 sps:$4 sm:$0xff]   ;;  %v2279_v54 = vld [vmem:[%s3417_s3 + $0x88] ss:$16 sps:$4 sm:$0xff]  }
  0x16   :  { %v2294_v1 = vld [vmem:[%s3417_s3 + $0xe0] ss:$16 sps:$4 sm:$0xff]  }
  0x17   :  { %217 = vmatpush1.bf16.msra.mxu0 %v2239_v20  ;;  %v2300_v3 = vld [vmem:[%s3417_s3 + $0x100] ss:$16 sps:$4 sm:$0xff]  }
  0x18   :  { %375 = vmatprep.subr.bf16.mxu0 %v2492_v21  ;;  %873 = vmatpush1.bf16.msra.mxu1 %v2264_v55  ;;  %v2306_v5 = vld [vmem:[%s3417_s3 + $0x120] ss:$16 sps:$4 sm:$0xff]   ;;  %v2287_v55 = vld [vmem:[%s3417_s3 + $0xac] ss:$16 sps:$4 sm:$0xff]  }
  0x19   :  { %874 = vmatprep.subr.bf16.mxu1 %v2272_v56  ;;  %v2312_v7 = vld [vmem:[%s3417_s3 + $0x140] ss:$16 sps:$4 sm:$0xff]   ;;  %v2285_v56 = vld [vmem:[%s3417_s3 + $0xa8] ss:$16 sps:$4 sm:$0xff]  }
  0x1a   :  { %v2318_v9 = vld [vmem:[%s3417_s3 + $0x160] ss:$16 sps:$4 sm:$0xff]  }
  0x1b   :  { %v2078_v13 = vld [vmem:[%s3416_s2 + $0x1] ss:$8 sm:$0x3] }
  0x1c   :  { %875 = vmatpush1.bf16.msra.mxu1 %v2270_v57  ;;  %v132_v15 = vrot.slane %v2078_v13, %v131_v12  ;;  %v136_v16 = vrot.slane %v2078_v13, %v135_v14  ;;  %v2293_v57 = vld [vmem:[%s3417_s3 + $0xcc] ss:$16 sps:$4 sm:$0xff]   ;;  %v2330_v10 = vld [vmem:[%s3417_s3 + $0x1a0] ss:$16 sps:$4 sm:$0xff]  }
  0x1d   :  { %876 = vmatprep.subr.bf16.mxu1 %v2278_v58  ;;  %v2291_v58 = vld [vmem:[%s3417_s3 + $0xc8] ss:$16 sps:$4 sm:$0xff]   ;;  %v2335_v13 = vld [vmem:[%s3417_s3 + $0x1ac] ss:$16 sps:$4 sm:$0xff]  }
  0x20   :  { %877 = vmatpush1.bf16.msra.mxu1 %v2276_v59  ;;  %v2299_v59 = vld [vmem:[%s3417_s3 + $0xec] ss:$16 sps:$4 sm:$0xff]  }
  0x21   :  { %878 = vmatprep.subr.bf16.mxu1 %v2284_v60  ;;  %v2297_v60 = vld [vmem:[%s3417_s3 + $0xe8] ss:$16 sps:$4 sm:$0xff]  }
  0x24   :  { %879 = vmatpush1.bf16.msra.mxu1 %v2282_v61  ;;  %v2305_v61 = vld [vmem:[%s3417_s3 + $0x10c] ss:$16 sps:$4 sm:$0xff]  }
  0x25   :  { %880 = vmatprep.subr.bf16.mxu1 %v2290_v62  ;;  %v2303_v62 = vld [vmem:[%s3417_s3 + $0x108] ss:$16 sps:$4 sm:$0xff]  }
  0x28   :  { %881 = vmatpush1.bf16.msra.mxu1 %v2288_v63  ;;  %v2311_v63 = vld [vmem:[%s3417_s3 + $0x12c] ss:$16 sps:$4 sm:$0xff]  }
  0x29   :  { %882 = vmatprep.subr.bf16.mxu1 %v2296_v0  ;;  %v2309_v0 = vld [vmem:[%s3417_s3 + $0x128] ss:$16 sps:$4 sm:$0xff]  }
  0x2c   :  { %883 = vmatpush1.bf16.msra.mxu1 %v2294_v1  ;;  %v2317_v1 = vld [vmem:[%s3417_s3 + $0x14c] ss:$16 sps:$4 sm:$0xff]  }
  0x2d   :  { %884 = vmatprep.subr.bf16.mxu1 %v2302_v2  ;;  %v2315_v2 = vld [vmem:[%s3417_s3 + $0x148] ss:$16 sps:$4 sm:$0xff]  }
  0x30   :  { %885 = vmatpush1.bf16.msra.mxu1 %v2300_v3  ;;  %v2323_v3 = vld [vmem:[%s3417_s3 + $0x16c] ss:$16 sps:$4 sm:$0xff]  }
  0x31   :  { %886 = vmatprep.subr.bf16.mxu1 %v2308_v4  ;;  %v2321_v4 = vld [vmem:[%s3417_s3 + $0x168] ss:$16 sps:$4 sm:$0xff]  }
  0x34   :  { %887 = vmatpush1.bf16.msra.mxu1 %v2306_v5  ;;  %v2326_v5 = vld [vmem:[%s3417_s3 + $0x184] ss:$16 sps:$4 sm:$0xff]  }
  0x35   :  { %888 = vmatprep.subr.bf16.mxu1 %v2314_v6  ;;  %v2324_v6 = vld [vmem:[%s3417_s3 + $0x180] ss:$16 sps:$4 sm:$0xff]  }
  0x38   :  { %889 = vmatpush1.bf16.msra.mxu1 %v2312_v7  ;;  %v2329_v7 = vld [vmem:[%s3417_s3 + $0x18c] ss:$16 sps:$4 sm:$0xff]  }
  0x39   :  { %890 = vmatprep.subr.bf16.mxu1 %v2320_v8  ;;  %v2327_v8 = vld [vmem:[%s3417_s3 + $0x188] ss:$16 sps:$4 sm:$0xff]  }
  0x3c   :  { %891 = vmatpush1.bf16.msra.mxu1 %v2318_v9  ;;  %v2332_v9 = vld [vmem:[%s3417_s3 + $0x1a4] ss:$16 sps:$4 sm:$0xff]  }
  0x3d   :  { %892 = vmatprep.subr.bf16.mxu1 %v2326_v5  ;;  %v3016_v5 = vld [vmem:[%s3417_s3 + $0x288] ss:$16 sps:$4 sm:$0xff]  }
  0x40   :  { %893 = vmatpush1.bf16.msra.mxu1 %v2324_v6  ;;  %v3022_v6 = vld [vmem:[%s3417_s3 + $0x2ac] ss:$16 sps:$4 sm:$0xff]  }
  0x41   :  { %894 = vmatprep.subr.bf16.mxu1 %v2332_v9  ;;  %v3040_v9 = vld [vmem:[%s3417_s3 + $0x2c8] ss:$16 sps:$4 sm:$0xff]  }
  0x44   :  { %895 = vmatpush1.bf16.msra.mxu1 %v2330_v10  ;;  %v3046_v10 = vld [vmem:[%s3417_s3 + $0x2ec] ss:$16 sps:$4 sm:$0xff]  }
  0xe1   :  { %v2216_v23 = vpop.f32.mrb[0].mxu1 }
  0xe2   :  { %v102_v24 = vadd.f32 %v2216_v23, %v31_v22  ;;  %v93_v25 = vpop.f32.mrb[1].mxu1 }
  0xe3   :  { %v94_v26 = vadd.f32 %v93_v25, %v31_v22  ;;  %v2217_v27 = vpop.f32.mrb[2].mxu1 }
  0xe4   :  { %v105_v28 = vadd.f32 %v2217_v27, %v31_v22  ;;  %v96_v29 = vpop.f32.mrb[3].mxu1  ;;  %v110_v31 = vmax.f32 %v102_v24, 0.0 }
  0xe5   :  { %v97_v30 = vadd.f32 %v96_v29, %v31_v22  ;;  %v108_v33 = vmax.f32 %v94_v26, 0.0 }
  0xe6   :  { %v111_v32 = vmax.f32 %v105_v28, 0.0 }
  0xe7   :  { %v109_v34 = vmax.f32 %v97_v30, 0.0 }
  0xe8   :  { %v127_v35 = vpack.c.bf16 %v111_v32, %v110_v31 }
  0xe9   :  { %v126_v37 = vpack.c.bf16 %v109_v34, %v108_v33  ;;  %v2255_v33 = vld [vmem:[%s3417_s3 + $0x8] ss:$16 sps:$4 sm:$0xff]  }
  0xeb   :  { %2091 = vmatmul.mubr.msk.bf16.vlgmr.msra.gmra.mrb[0].mxu0 %vm199_vm1, %v126_v37 }
  0xec   :  { %248 = vmatprep.mubr.bf16.mxu0 %v2492_v21  ;;  %376 = vmatpush1.bf16.msra.mxu0 %v2240_v36  ;;  %v2263_v36 = vld [vmem:[%s3417_s3 + $0x2c] ss:$16 sps:$4 sm:$0xff]  }
  0xed   :  { %377 = vmatprep.subr.bf16.mxu0 %v2492_v21 }
  0xf0   :  { %378 = vmatpush1.bf16.msra.mxu0 %v2241_v38 }
  0xf1   :  { %379 = vmatprep.subr.bf16.mxu0 %v2492_v21 }
  0xf3   :  { %2092 = vmatmul.mubr.msk.bf16.gmra.mrb[4].mxu0 %vm199_vm1, %v127_v35 }
  0xf4   :  { %380 = vmatpush1.bf16.msra.mxu0 %v2242_v39 }
  0xf5   :  { %381 = vmatprep.subr.bf16.mxu0 %v2492_v21 }
  0xf8   :  { %382 = vmatpush1.bf16.msra.mxu0 %v2243_v40 }
  0xf9   :  { %383 = vmatprep.subr.bf16.mxu0 %v2492_v21 }
  0xfc   :  { %384 = vmatpush1.bf16.msra.mxu0 %v2244_v41 }
  0xfd   :  { %385 = vmatprep.subr.bf16.mxu0 %v2492_v21 }
 0x100   :  { %386 = vmatpush1.bf16.msra.mxu0 %v2245_v42  ;;  %v2261_v42 = vld [vmem:[%s3417_s3 + $0x28] ss:$16 sps:$4 sm:$0xff]  }
 0x101   :  { %387 = vmatprep.subr.bf16.mxu0 %v2492_v21 }
 0x104   :  { %388 = vmatpush1.bf16.msra.mxu0 %v2246_v43 }
 0x105   :  { %389 = vmatprep.subr.bf16.mxu0 %v2492_v21 }
 0x108   :  { %390 = vmatpush1.bf16.msra.mxu0 %v2247_v44 }
 0x109   :  { %391 = vmatprep.subr.bf16.mxu0 %v2492_v21 }
 0x10c   :  { %392 = vmatpush1.bf16.msra.mxu0 %v2248_v45  ;;  %v2269_v45 = vld [vmem:[%s3417_s3 + $0x4c] ss:$16 sps:$4 sm:$0xff]  }
 0x10d   :  { %393 = vmatprep.subr.bf16.mxu0 %v2492_v21 }
 0x110   :  { %394 = vmatpush1.bf16.msra.mxu0 %v2249_v46 }
 0x111   :  { %395 = vmatprep.subr.bf16.mxu0 %v2492_v21 }
 0x114   :  { %396 = vmatpush1.bf16.msra.mxu0 %v2250_v47 }
 0x115   :  { %397 = vmatprep.subr.bf16.mxu0 %v2492_v21 }
 0x118   :  { %398 = vmatpush1.bf16.msra.mxu0 %v2251_v48 }
 0x119   :  { %911 = vmatprep.subr.bf16.mxu0 %v2257_v51  ;;  %v2275_v51 = vld [vmem:[%s3417_s3 + $0x6c] ss:$16 sps:$4 sm:$0xff]  }
 0x1be   :  { %v240_v17 = vpop.f32.mrb[0].mxu0 }
 0x1bf   :  { %v241_v18 = vadd.f32 %v240_v17, %v132_v15  ;;  %v242_v19 = vpop.f32.mrb[1].mxu0  ;;  %v2336_v17 = vld [vmem:[%s3417_s3 + $0x1c0] ss:$16 sps:$4 sm:$0xff]  }
 0x1c0   :  { %v243_v20 = vadd.f32 %v242_v19, %v136_v16  ;;  %v244_v22 = vpop.f32.mrb[2].mxu0  ;;  %v2339_v19 = vld [vmem:[%s3417_s3 + $0x1c8] ss:$16 sps:$4 sm:$0xff]  }
 0x1c1   :  { %v245_v23 = vadd.f32 %v244_v22, %v132_v15  ;;  %v246_v24 = vpop.f32.mrb[3].mxu0  ;;  %v259_v26 = vmax.f32 %v241_v18, 0.0  ;;  %v2341_v18 = vld [vmem:[%s3417_s3 + $0x1cc] ss:$16 sps:$4 sm:$0xff]   ;;  %v2342_v22 = vld [vmem:[%s3417_s3 + $0x1e0] ss:$16 sps:$4 sm:$0xff]  }
 0x1c2   :  { %v247_v25 = vadd.f32 %v246_v24, %v136_v16  ;;  %v260_v28 = vmax.f32 %v243_v20, 0.0  ;;  %v2344_v20 = vld [vmem:[%s3417_s3 + $0x1e4] ss:$16 sps:$4 sm:$0xff]   ;;  %v2345_v24 = vld [vmem:[%s3417_s3 + $0x1e8] ss:$16 sps:$4 sm:$0xff]  }
 0x1c3   :  { %v261_v27 = vmax.f32 %v245_v23, 0.0  ;;  %v2347_v23 = vld [vmem:[%s3417_s3 + $0x1ec] ss:$16 sps:$4 sm:$0xff]  }
 0x1c4   :  { %v262_v29 = vmax.f32 %v247_v25, 0.0  ;;  %v2843_v25 = vld [vmem:[%s3417_s3 + $0x204] ss:$16 sps:$4 sm:$0xff]  }
 0x1c5   :  { %v292_v30 = vpack.c.bf16 %v261_v27, %v259_v26  ;;  %v291_v26 = vld [vmem:[%s3416_s2 + $0x2] ss:$0 sm:$0xff] }
 0x1c6   :  { %v293_v31 = vpack.c.bf16 %v262_v29, %v260_v28  ;;  %v250_v32 = vpop.f32.mrb[4].mxu0 }
 0x1c7   :  { %v251_v34 = vadd.f32 %v250_v32, %v132_v15  ;;  %v252_v35 = vpop.f32.mrb[5].mxu0 }
 0x1c8   :  { %v253_v37 = vadd.f32 %v252_v35, %v136_v16  ;;  %v254_v38 = vpop.f32.mrb[6].mxu0  ;;  %2105 = vmatprep.mubr.msk.bf16.mxu0 %vm368_vm2, %v293_v31 }
 0x1c9   :  { %v255_v39 = vadd.f32 %v254_v38, %v132_v15  ;;  %v256_v40 = vpop.f32.mrb[7].mxu0  ;;  %408 = vmatmul.mubr.bf16.vlgmr.msra.gmra.mrb[8].mxu0 %v292_v30  ;;  %v263_v43 = vmax.f32 %v251_v34, 0.0  ;;  %v2333_v15 = vld [vmem:[%s3417_s3 + $0x1a8] ss:$16 sps:$4 sm:$0xff]  }
 0x1ca   :  { %v257_v41 = vadd.f32 %v256_v40, %v136_v16  ;;  %912 = vmatpush1.bf16.msra.mxu0 %v2255_v33  ;;  %v264_v46 = vmax.f32 %v253_v37, 0.0  ;;  %v2338_v16 = vld [vmem:[%s3417_s3 + $0x1c4] ss:$16 sps:$4 sm:$0xff]  }
 0x1cb   :  { %v265_v44 = vmax.f32 %v255_v39, 0.0  ;;  %913 = vmatprep.subr.bf16.mxu0 %v2263_v36  ;;  %896 = vmatprep.subr.bf16.mxu1 %v2338_v16  ;;  %v526_v16 = vld [vmem:[%s3418_s4] sm:$0xf] }
 0x1cc   :  { %v266_v47 = vmax.f32 %v257_v41, 0.0  ;;  %897 = vmatpush1.bf16.msra.mxu1 %v2336_v17  ;;  %v542_v17 = vsub.s32 3, %v2710_v11 }
 0x1cd   :  { %v294_v48 = vpack.c.bf16 %v265_v44, %v263_v43  ;;  %898 = vmatprep.subr.bf16.mxu1 %v2344_v20  ;;  %v531_v20 = vrot.slane %v526_v16, %v131_v12 }
 0x1ce   :  { %v295_v49 = vpack.c.bf16 %v266_v47, %v264_v46  ;;  %914 = vmatpush1.bf16.msra.mxu0 %v2261_v42  ;;  %v2858_v46 = vld [vmem:[%s3417_s3 + $0x224] ss:$16 sps:$4 sm:$0xff]   ;;  %v2864_v47 = vld [vmem:[%s3417_s3 + $0x220] ss:$16 sps:$4 sm:$0xff]  }
 0x1cf   :  { %915 = vmatprep.subr.bf16.mxu0 %v2269_v45  ;;  %v2853_v45 = vld [vmem:[%s3417_s3 + $0x200] ss:$16 sps:$4 sm:$0xff]  }
 0x1d0   :  { %2106 = vmatprep.mubr.msk.bf16.mxu0 %vm368_vm2, %v295_v49  ;;  %899 = vmatpush1.bf16.msra.mxu1 %v2342_v22  ;;  %v2880_v49 = vld [vmem:[%s3417_s3 + $0x240] ss:$16 sps:$4 sm:$0xff]  }
 0x1d1   :  { %416 = vmatmul.mubr.bf16.gmra.mrb[12].mxu0 %v294_v48  ;;  %1114 = vmatprep.subr.bf16.mxu1 %v2843_v25  ;;  %v2871_v48 = vld [vmem:[%s3417_s3 + $0x244] ss:$16 sps:$4 sm:$0xff]  }
 0x1d2   :  { %916 = vmatpush1.bf16.msra.mxu0 %v2267_v50  ;;  %v2886_v50 = vld [vmem:[%s3417_s3 + $0x264] ss:$16 sps:$4 sm:$0xff]  }
 0x1d3   :  { %917 = vmatprep.subr.bf16.mxu0 %v2275_v51  ;;  %v2894_v51 = vld [vmem:[%s3417_s3 + $0x260] ss:$16 sps:$4 sm:$0xff]  }
 0x1d6   :  { %918 = vmatpush1.bf16.msra.mxu0 %v2273_v52  ;;  %v2900_v52 = vld [vmem:[%s3417_s3 + $0x284] ss:$16 sps:$4 sm:$0xff]  }
 0x1d7   :  { %919 = vmatprep.subr.bf16.mxu0 %v2281_v53  ;;  %v2908_v53 = vld [vmem:[%s3417_s3 + $0x280] ss:$16 sps:$4 sm:$0xff]  }
 0x1da   :  { %920 = vmatpush1.bf16.msra.mxu0 %v2279_v54  ;;  %v2914_v54 = vld [vmem:[%s3417_s3 + $0x2a4] ss:$16 sps:$4 sm:$0xff]  }
 0x1db   :  { %921 = vmatprep.subr.bf16.mxu0 %v2287_v55  ;;  %v2922_v55 = vld [vmem:[%s3417_s3 + $0x2a0] ss:$16 sps:$4 sm:$0xff]  }
 0x1de   :  { %922 = vmatpush1.bf16.msra.mxu0 %v2285_v56  ;;  %v2928_v56 = vld [vmem:[%s3417_s3 + $0x2c4] ss:$16 sps:$4 sm:$0xff]  }
 0x1df   :  { %923 = vmatprep.subr.bf16.mxu0 %v2293_v57  ;;  %v2936_v57 = vld [vmem:[%s3417_s3 + $0x2c0] ss:$16 sps:$4 sm:$0xff]  }
 0x1e2   :  { %924 = vmatpush1.bf16.msra.mxu0 %v2291_v58  ;;  %v2942_v58 = vld [vmem:[%s3417_s3 + $0x2e4] ss:$16 sps:$4 sm:$0xff]  }
 0x1e3   :  { %925 = vmatprep.subr.bf16.mxu0 %v2299_v59  ;;  %v2950_v59 = vld [vmem:[%s3417_s3 + $0x2e0] ss:$16 sps:$4 sm:$0xff]  }
 0x1e6   :  { %926 = vmatpush1.bf16.msra.mxu0 %v2297_v60  ;;  %v2956_v60 = vld [vmem:[%s3417_s3 + $0x20c] ss:$16 sps:$4 sm:$0xff]  }
 0x1e7   :  { %927 = vmatprep.subr.bf16.mxu0 %v2305_v61  ;;  %v2964_v61 = vld [vmem:[%s3417_s3 + $0x208] ss:$16 sps:$4 sm:$0xff]  }
 0x1ea   :  { %928 = vmatpush1.bf16.msra.mxu0 %v2303_v62  ;;  %v2970_v62 = vld [vmem:[%s3417_s3 + $0x22c] ss:$16 sps:$4 sm:$0xff]  }
 0x1eb   :  { %929 = vmatprep.subr.bf16.mxu0 %v2311_v63  ;;  %v2979_v63 = vld [vmem:[%s3417_s3 + $0x228] ss:$16 sps:$4 sm:$0xff]  }
 0x1ee   :  { %930 = vmatpush1.bf16.msra.mxu0 %v2309_v0  ;;  %v2986_v0 = vld [vmem:[%s3417_s3 + $0x24c] ss:$16 sps:$4 sm:$0xff]  }
 0x1ef   :  { %931 = vmatprep.subr.bf16.mxu0 %v2317_v1  ;;  %v2992_v1 = vld [vmem:[%s3417_s3 + $0x248] ss:$16 sps:$4 sm:$0xff]  }
 0x1f2   :  { %932 = vmatpush1.bf16.msra.mxu0 %v2315_v2  ;;  %v2998_v2 = vld [vmem:[%s3417_s3 + $0x26c] ss:$16 sps:$4 sm:$0xff]  }
 0x1f3   :  { %933 = vmatprep.subr.bf16.mxu0 %v2323_v3  ;;  %v3004_v3 = vld [vmem:[%s3417_s3 + $0x268] ss:$16 sps:$4 sm:$0xff]  }
 0x1f6   :  { %934 = vmatpush1.bf16.msra.mxu0 %v2321_v4  ;;  %v3010_v4 = vld [vmem:[%s3417_s3 + $0x28c] ss:$16 sps:$4 sm:$0xff]  }
 0x1f7   :  { %935 = vmatprep.subr.bf16.mxu0 %v2329_v7  ;;  %v3028_v7 = vld [vmem:[%s3417_s3 + $0x2a8] ss:$16 sps:$4 sm:$0xff]  }
 0x1fa   :  { %936 = vmatpush1.bf16.msra.mxu0 %v2327_v8  ;;  %v3034_v8 = vld [vmem:[%s3417_s3 + $0x2cc] ss:$16 sps:$4 sm:$0xff]  }
 0x1fb   :  { %937 = vmatprep.subr.bf16.mxu0 %v2335_v13  ;;  %v3052_v13 = vld [vmem:[%s3417_s3 + $0x2e8] ss:$16 sps:$4 sm:$0xff]  }
 0x1fe   :  { %938 = vmatpush1.bf16.msra.mxu0 %v2333_v15  ;;  %v538_v15 = vsub.s32 2, %v2710_v11 }
 0x1ff   :  { %939 = vmatprep.subr.bf16.mxu0 %v2341_v18 }
 0x200   :  { %v539_v22 = vrot.slane %v526_v16, %v538_v15 }
 0x202   :  { %940 = vmatpush1.bf16.msra.mxu0 %v2339_v19 }
 0x203   :  { %941 = vmatprep.subr.bf16.mxu0 %v2347_v23 }
 0x206   :  { %942 = vmatpush1.bf16.msra.mxu0 %v2345_v24 }
 0x207   :  { %1220 = vmatprep.subr.bf16.mxu0 %v2843_v25 }
 0x29c   :  { %v409_v27 = vpop.f32.mrb[8].mxu0 }
 0x29d   :  { %v410_v28 = vadd.f32 %v409_v27, %v291_v26  ;;  %v411_v29 = vpop.f32.mrb[9].mxu0  ;;  %v543_v27 = vrot.slane %v526_v16, %v542_v17 }
 0x29e   :  { %v412_v30 = vpop.f32.mrb[10].mxu0 }
 0x29f   :  { %v413_v31 = vadd.f32 %v412_v30, %v291_v26  ;;  %v414_v32 = vpop.f32.mrb[11].mxu0  ;;  %v424_v33 = vmax.f32 %v410_v28, 0.0 }
 0x2a1   :  { %v425_v34 = vmax.f32 %v413_v31, 0.0 }
 0x2a3   :  { %v524_v35 = vpack.c.bf16 %v425_v34, %v424_v33 }
 0x2a4   :  { %v417_v36 = vpop.f32.mrb[12].mxu0 }
 0x2a5   :  { %v418_v37 = vadd.f32 %v417_v36, %v291_v26  ;;  %v419_v38 = vpop.f32.mrb[13].mxu0 }
 0x2a6   :  { %v420_v39 = vpop.f32.mrb[14].mxu0 }
 0x2a7   :  { %v421_v40 = vadd.f32 %v420_v39, %v291_v26  ;;  %v422_v41 = vpop.f32.mrb[15].mxu0  ;;  %v426_v42 = vmax.f32 %v418_v37, 0.0  ;;  %v535_v26 = vrot.slane %v526_v16, %v135_v14 }
 0x2a9   :  { %v427_v43 = vmax.f32 %v421_v40, 0.0 }
 0x2ab   :  { %v525_v44 = vpack.c.bf16 %v427_v43, %v426_v42 }
 0x2ad   :  { %900 = vmatprep.mubr.bf16.mxu1 %v525_v44  ;;  %943 = vmatprep.mubr.bf16.mxu0 %v525_v44 }
 0x2ae   :  { %901 = vmatmul.mubr.bf16.vlgmr.msra.gmra.mrb[4].mxu1 %v524_v35  ;;  %944 = vmatmul.mubr.bf16.vlgmr.msra.gmra.mrb[16].mxu0 %v524_v35 }
 0x2af   :  { %1115 = vmatpush1.bf16.msra.mxu1 %v2853_v45  ;;  %1146 = vmatprep.mubr.bf16.mxu1 %v2492_v21 }
 0x2b0   :  { %1116 = vmatprep.subr.bf16.mxu1 %v2858_v46  ;;  %1221 = vmatpush1.bf16.msra.mxu0 %v2853_v45 }
 0x2b1   :  { %1222 = vmatprep.subr.bf16.mxu0 %v2858_v46  ;;  %1252 = vmatprep.mubr.bf16.mxu0 %v2492_v21 }
 0x2b3   :  { %1117 = vmatpush1.bf16.msra.mxu1 %v2864_v47 }
 0x2b4   :  { %1118 = vmatprep.subr.bf16.mxu1 %v2871_v48  ;;  %1223 = vmatpush1.bf16.msra.mxu0 %v2864_v47 }
 0x2b5   :  { %1224 = vmatprep.subr.bf16.mxu0 %v2871_v48 }
 0x2b7   :  { %1119 = vmatpush1.bf16.msra.mxu1 %v2880_v49 }
 0x2b8   :  { %1120 = vmatprep.subr.bf16.mxu1 %v2886_v50  ;;  %1225 = vmatpush1.bf16.msra.mxu0 %v2880_v49 }
 0x2b9   :  { %1226 = vmatprep.subr.bf16.mxu0 %v2886_v50 }
 0x2bb   :  { %1121 = vmatpush1.bf16.msra.mxu1 %v2894_v51 }
 0x2bc   :  { %1122 = vmatprep.subr.bf16.mxu1 %v2900_v52  ;;  %1227 = vmatpush1.bf16.msra.mxu0 %v2894_v51 }
 0x2bd   :  { %1228 = vmatprep.subr.bf16.mxu0 %v2900_v52 }
 0x2bf   :  { %1123 = vmatpush1.bf16.msra.mxu1 %v2908_v53 }
 0x2c0   :  { %1124 = vmatprep.subr.bf16.mxu1 %v2914_v54  ;;  %1229 = vmatpush1.bf16.msra.mxu0 %v2908_v53 }
 0x2c1   :  { %1230 = vmatprep.subr.bf16.mxu0 %v2914_v54 }
 0x2c3   :  { %1125 = vmatpush1.bf16.msra.mxu1 %v2922_v55 }
 0x2c4   :  { %1126 = vmatprep.subr.bf16.mxu1 %v2928_v56  ;;  %1231 = vmatpush1.bf16.msra.mxu0 %v2922_v55 }
 0x2c5   :  { %1232 = vmatprep.subr.bf16.mxu0 %v2928_v56 }
 0x2c7   :  { %1127 = vmatpush1.bf16.msra.mxu1 %v2936_v57 }
 0x2c8   :  { %1128 = vmatprep.subr.bf16.mxu1 %v2942_v58  ;;  %1233 = vmatpush1.bf16.msra.mxu0 %v2936_v57 }
 0x2c9   :  { %1234 = vmatprep.subr.bf16.mxu0 %v2942_v58 }
 0x2cb   :  { %1129 = vmatpush1.bf16.msra.mxu1 %v2950_v59 }
 0x2cc   :  { %1155 = vmatprep.subr.bf16.mxu1 %v2956_v60  ;;  %1235 = vmatpush1.bf16.msra.mxu0 %v2950_v59 }
 0x2cd   :  { %1344 = vmatprep.subr.bf16.mxu0 %v2843_v25 }
 0x2ce   :  { %1147 = vmatmul.mubr.bf16.vlgmr.msra.gmra.mrb[8].mxu1 %v2492_v21 }
 0x2cf   :  { %1156 = vmatpush1.bf16.msra.mxu1 %v2964_v61  ;;  %1187 = vmatprep.mubr.bf16.mxu1 %v2492_v21 }
 0x2d0   :  { %1157 = vmatprep.subr.bf16.mxu1 %v2970_v62 }
 0x2d3   :  { %1158 = vmatpush1.bf16.msra.mxu1 %v2979_v63 }
 0x2d4   :  { %1159 = vmatprep.subr.bf16.mxu1 %v2986_v0 }
 0x2d7   :  { %1160 = vmatpush1.bf16.msra.mxu1 %v2992_v1 }
 0x2d8   :  { %1161 = vmatprep.subr.bf16.mxu1 %v2998_v2 }
 0x2db   :  { %1162 = vmatpush1.bf16.msra.mxu1 %v3004_v3 }
 0x2dc   :  { %1163 = vmatprep.subr.bf16.mxu1 %v3010_v4 }
 0x2df   :  { %1164 = vmatpush1.bf16.msra.mxu1 %v3016_v5 }
 0x2e0   :  { %1165 = vmatprep.subr.bf16.mxu1 %v3022_v6 }
 0x2e3   :  { %1166 = vmatpush1.bf16.msra.mxu1 %v3028_v7 }
 0x2e4   :  { %1167 = vmatprep.subr.bf16.mxu1 %v3034_v8 }
 0x2e7   :  { %1168 = vmatpush1.bf16.msra.mxu1 %v3040_v9 }
 0x2e8   :  { %1169 = vmatprep.subr.bf16.mxu1 %v3046_v10 }
 0x2eb   :  { %1170 = vmatpush1.bf16.msra.mxu1 %v3052_v13 }
 0x2ec   :  { %1261 = vmatprep.subr.bf16.mxu1 %v2956_v60 }
 0x2ee   :  { %1188 = vmatmul.mubr.bf16.vlgmr.msra.gmra.mrb[12].mxu1 %v2492_v21 }
 0x2ef   :  { %1262 = vmatpush1.bf16.msra.mxu1 %v2964_v61  ;;  %1293 = vmatprep.mubr.bf16.mxu1 %v2492_v21 }
 0x2f0   :  { %1263 = vmatprep.subr.bf16.mxu1 %v2970_v62 }
 0x2f3   :  { %1264 = vmatpush1.bf16.msra.mxu1 %v2979_v63 }
 0x2f4   :  { %1265 = vmatprep.subr.bf16.mxu1 %v2986_v0 }
 0x2f7   :  { %1266 = vmatpush1.bf16.msra.mxu1 %v2992_v1 }
 0x2f8   :  { %1267 = vmatprep.subr.bf16.mxu1 %v2998_v2 }
 0x2fb   :  { %1268 = vmatpush1.bf16.msra.mxu1 %v3004_v3 }
 0x2fc   :  { %1269 = vmatprep.subr.bf16.mxu1 %v3010_v4 }
 0x2ff   :  { %1270 = vmatpush1.bf16.msra.mxu1 %v3016_v5 }
 0x300   :  { %1271 = vmatprep.subr.bf16.mxu1 %v3022_v6 }
 0x303   :  { %1272 = vmatpush1.bf16.msra.mxu1 %v3028_v7 }
 0x304   :  { %1273 = vmatprep.subr.bf16.mxu1 %v3034_v8 }
 0x307   :  { %1274 = vmatpush1.bf16.msra.mxu1 %v3040_v9 }
 0x308   :  { %1275 = vmatprep.subr.bf16.mxu1 %v3046_v10 }
 0x30b   :  { %1276 = vmatpush1.bf16.msra.mxu1 %v3052_v13 }
 0x30c   :  { %1385 = vmatprep.subr.bf16.mxu1 %v2956_v60 }
 0x381   :  { %v902_v18 = vpop.f32.mrb[4].mxu1  ;;  %v945_v19 = vpop.f32.mrb[16].mxu0 }
 0x382   :  { %v904_v23 = vpop.f32.mrb[5].mxu1  ;;  %v947_v24 = vpop.f32.mrb[17].mxu0  ;;  %v3094_v11 = vadd.f32 %v902_v18, %v531_v20  ;;  %v3100_v15 = vadd.f32 %v945_v19, %v539_v22 }
 0x383   :  { %v906_v28 = vpop.f32.mrb[6].mxu1  ;;  %v949_v29 = vpop.f32.mrb[18].mxu0  ;;  %v3092_v39 = vadd.f32 %v904_v23, %v535_v26  ;;  %v3098_v43 = vadd.f32 %v947_v24, %v543_v27 }
 0x384   :  { %v3084_v30 = vadd.f32 %v906_v28, %v531_v20  ;;  %v3086_v31 = vadd.f32 %v949_v29, %v539_v22  ;;  %v908_v32 = vpop.f32.mrb[7].mxu1  ;;  %v951_v33 = vpop.f32.mrb[19].mxu0 }
 0x385   :  { %v3088_v34 = vadd.f32 %v908_v32, %v535_v26  ;;  %v3090_v35 = vadd.f32 %v951_v33, %v543_v27 }
 0x3a1   :  { %v1148_v12 = vpop.f32.mrb[8].mxu1 }
 0x3a2   :  { %v1150_v36 = vpop.f32.mrb[9].mxu1  ;;  %v1196_v40 = vadd.f32 %v1148_v12, %v3094_v11 }
 0x3a3   :  { %v1152_v37 = vpop.f32.mrb[10].mxu1  ;;  %v1197_v14 = vadd.f32 %v1150_v36, %v3092_v39 }
 0x3a4   :  { %v1153_v38 = vpop.f32.mrb[11].mxu1  ;;  %v1200_v42 = vmul.f32 0.5, %v1196_v40 }
 0x3a5   :  { %v1201_v41 = vmul.f32 0.5, %v1197_v14 }
 0x3a7   :  { %2396 = vtanh.f32 %v1201_v41 }
 0x3a8   :  { %2398 = vtanh.f32 %v1200_v42 }
 0x3b1   :  { %v2397_v26 = vpop.eup %2396 }
 0x3b2   :  { %v2399_v28 = vpop.eup %2398  ;;  %v1207_v29 = vadd.f32 1.0, %v2397_v26 }
 0x3b3   :  { %v1206_v33 = vadd.f32 1.0, %v2399_v28 }
 0x3b4   :  { %v1210_v12 = vmul.f32 0.5, %v1207_v29 }
 0x3b5   :  { %v1209_v24 = vmul.f32 0.5, %v1206_v33 }
 0x3b6   :  { %v1213_v36 = vmul.f32 0.0, %v1210_v12 }
 0x3c1   :  { %v1189_v44 = vpop.f32.mrb[12].mxu1 }
 0x3c2   :  { %v1191_v16 = vpop.f32.mrb[13].mxu1  ;;  %v1198_v18 = vadd.f32 %v1189_v44, %v3100_v15 }
 0x3c3   :  { %v1199_v17 = vadd.f32 %v1191_v16, %v3098_v43  ;;  %v1193_v23 = vpop.f32.mrb[14].mxu1 }
 0x3c4   :  { %v1194_v20 = vpop.f32.mrb[15].mxu1  ;;  %v1202_v32 = vmul.f32 0.5, %v1198_v18 }
 0x3c5   :  { %2400 = vtanh.f32 %v1199_v17 }
 0x3c6   :  { %2402 = vtanh.f32 %v1202_v32 }
 0x3cf   :  { %v2401_v27 = vpop.eup %2400 }
 0x3d0   :  { %v1214_v19 = vmul.f32 %v2401_v27, %v1209_v24  ;;  %v2403_v37 = vpop.eup %2402 }
 0x3d1   :  { %v1208_v38 = vadd.f32 1.0, %v2403_v37 }
 0x3d2   :  { %v3104_v22 = vadd.f32 %v1214_v19, %v1213_v36 }
 0x3d3   :  { %v1211_v14 = vmul.f32 0.5, %v1208_v38 }
 0x3d4   :  { %2404 = vtanh.f32 %v3104_v22 }
 0x3de   :  { %v2405_v40 = vpop.eup %2404 }
 0x3df   :  { %v1217_v41 = vmul.f32 %v2405_v40, %v1211_v14 }
 0x3e1   :  { %1218 = vst [vmem:[%s3419_s5] sm:$0x3] %v1217_v41  ;;  %v1219_v42 = vpack.c.bf16 %v1217_v41, %v1217_v41 }
 0x3e3   :  { %1253 = vmatmul.mubr.bf16.vlgmr.msra.gmra.mrb[20].mxu0 %v1219_v42  ;;  %1294 = vmatmul.mubr.bf16.vlgmr.msra.gmra.mrb[16].mxu1 %v1219_v42 }
 0x3e4   :  { %1345 = vmatpush1.bf16.msra.mxu0 %v2853_v45  ;;  %1386 = vmatpush1.bf16.msra.mxu1 %v2964_v61 }
 0x3e5   :  { %1346 = vmatprep.subr.bf16.mxu0 %v2858_v46  ;;  %1387 = vmatprep.subr.bf16.mxu1 %v2970_v62 }
 0x3e6   :  { %1376 = vmatprep.mubr.bf16.mxu0 %v2492_v21  ;;  %1417 = vmatprep.mubr.bf16.mxu1 %v2492_v21 }
 0x3e8   :  { %1347 = vmatpush1.bf16.msra.mxu0 %v2864_v47  ;;  %1388 = vmatpush1.bf16.msra.mxu1 %v2979_v63 }
 0x3e9   :  { %1348 = vmatprep.subr.bf16.mxu0 %v2871_v48  ;;  %1389 = vmatprep.subr.bf16.mxu1 %v2986_v0 }
 0x3ec   :  { %1349 = vmatpush1.bf16.msra.mxu0 %v2880_v49  ;;  %1390 = vmatpush1.bf16.msra.mxu1 %v2992_v1 }
 0x3ed   :  { %1350 = vmatprep.subr.bf16.mxu0 %v2886_v50  ;;  %1391 = vmatprep.subr.bf16.mxu1 %v2998_v2 }
 0x3f0   :  { %1351 = vmatpush1.bf16.msra.mxu0 %v2894_v51  ;;  %1392 = vmatpush1.bf16.msra.mxu1 %v3004_v3 }
 0x3f1   :  { %1352 = vmatprep.subr.bf16.mxu0 %v2900_v52  ;;  %1393 = vmatprep.subr.bf16.mxu1 %v3010_v4 }
 0x3f4   :  { %1353 = vmatpush1.bf16.msra.mxu0 %v2908_v53  ;;  %1394 = vmatpush1.bf16.msra.mxu1 %v3016_v5 }
 0x3f5   :  { %1354 = vmatprep.subr.bf16.mxu0 %v2914_v54  ;;  %1395 = vmatprep.subr.bf16.mxu1 %v3022_v6 }
 0x3f8   :  { %1355 = vmatpush1.bf16.msra.mxu0 %v2922_v55  ;;  %1396 = vmatpush1.bf16.msra.mxu1 %v3028_v7 }
 0x3f9   :  { %1356 = vmatprep.subr.bf16.mxu0 %v2928_v56  ;;  %1397 = vmatprep.subr.bf16.mxu1 %v3034_v8 }
 0x3fc   :  { %1357 = vmatpush1.bf16.msra.mxu0 %v2936_v57  ;;  %1398 = vmatpush1.bf16.msra.mxu1 %v3040_v9 }
 0x3fd   :  { %1358 = vmatprep.subr.bf16.mxu0 %v2942_v58  ;;  %1399 = vmatprep.subr.bf16.mxu1 %v3046_v10 }
 0x400   :  { %1359 = vmatpush1.bf16.msra.mxu0 %v2950_v59  ;;  %1400 = vmatpush1.bf16.msra.mxu1 %v3052_v13 }
 0x401   :  { %1468 = vmatprep.subr.bf16.mxu0 %v2843_v25  ;;  %1509 = vmatprep.subr.bf16.mxu1 %v2956_v60 }
 0x4b6   :  { %v1254_v44 = vpop.f32.mrb[20].mxu0  ;;  %v1295_v16 = vpop.f32.mrb[16].mxu1 }
 0x4b7   :  { %v1306_v17 = vrot.slane %v1254_v44, 6  ;;  %v1256_v23 = vpop.f32.mrb[21].mxu0  ;;  %v1297_v18 = vpop.f32.mrb[17].mxu1  ;;  %v1308_v37 = vrot.slane %v1295_v16, 6 }
 0x4b8   :  { %v1307_v20 = vrot.slane %v1256_v23, 6  ;;  %v1258_v26 = vpop.f32.mrb[22].mxu0  ;;  %v1299_v28 = vpop.f32.mrb[18].mxu1  ;;  %v1309_v32 = vrot.slane %v1297_v18, 6 }
 0x4b9   :  { %v1314_v29 = vadd.f32 %v1306_v17, %v3094_v11  ;;  %v1259_v33 = vpop.f32.mrb[23].mxu0  ;;  %v1300_v12 = vpop.f32.mrb[19].mxu1  ;;  %v1316_v38 = vadd.f32 %v1308_v37, %v3100_v15 }
 0x4ba   :  { %v1315_v24 = vadd.f32 %v1307_v20, %v3092_v39  ;;  %v1317_v19 = vadd.f32 %v1309_v32, %v3098_v43  ;;  %v1332_v20 = vrot.slane %v3104_v22, 6 }
 0x4bb   :  { %v1318_v27 = vmul.f32 0.5, %v1314_v29  ;;  %v1320_v14 = vmul.f32 0.5, %v1316_v38 }
 0x4bc   :  { %v1319_v36 = vmul.f32 0.5, %v1315_v24 }
 0x4bd   :  { %2406 = vtanh.f32 %v1318_v27 }
 0x4be   :  { %2408 = vtanh.f32 %v1319_v36 }
 0x4bf   :  { %2410 = vtanh.f32 %v1317_v19 }
 0x4c0   :  { %2412 = vtanh.f32 %v1320_v14 }
 0x4c7   :  { %v2407_v40 = vpop.eup %2406 }
 0x4c8   :  { %v1324_v41 = vadd.f32 1.0, %v2407_v40  ;;  %v2409_v42 = vpop.eup %2408 }
 0x4c9   :  { %v1325_v17 = vadd.f32 1.0, %v2409_v42  ;;  %v2411_v23 = vpop.eup %2410 }
 0x4ca   :  { %v1327_v44 = vmul.f32 0.5, %v1324_v41  ;;  %v2413_v16 = vpop.eup %2412 }
 0x4cb   :  { %v1328_v18 = vmul.f32 0.5, %v1325_v17  ;;  %v1326_v32 = vadd.f32 1.0, %v2413_v16 }
 0x4cc   :  { %v1335_v26 = vmul.f32 %v2411_v23, %v1327_v44 }
 0x4cd   :  { %v1334_v28 = vmul.f32 %v1332_v20, %v1328_v18  ;;  %v1329_v33 = vmul.f32 0.5, %v1326_v32 }
 0x4cf   :  { %v3149_v29 = vadd.f32 %v1335_v26, %v1334_v28 }
 0x4d1   :  { %2414 = vtanh.f32 %v3149_v29 }
 0x4db   :  { %v2415_v12 = vpop.eup %2414 }
 0x4dc   :  { %v1338_v24 = vmul.f32 %v2415_v12, %v1329_v33 }
 0x4de   :  { %1339 = vst [vmem:[%s3419_s5] sm:$0xc] %v1338_v24  ;;  %v1340_v27 = vpack.c.bf16 %v1338_v24, %v1338_v24 }
 0x4e0   :  { %v1342_v36 = vrot.slane %v1340_v27, 1 }
 0x4e2   :  { %1377 = vmatmul.mubr.bf16.vlgmr.msra.gmra.mrb[24].mxu0 %v1342_v36  ;;  %1418 = vmatmul.mubr.bf16.vlgmr.msra.gmra.mrb[20].mxu1 %v1342_v36 }
 0x4e3   :  { %1469 = vmatpush1.bf16.msra.mxu0 %v2853_v45  ;;  %1510 = vmatpush1.bf16.msra.mxu1 %v2964_v61 }
 0x4e4   :  { %1470 = vmatprep.subr.bf16.mxu0 %v2858_v46  ;;  %1511 = vmatprep.subr.bf16.mxu1 %v2970_v62 }
 0x4e5   :  { %1500 = vmatprep.mubr.bf16.mxu0 %v2492_v21  ;;  %1541 = vmatprep.mubr.bf16.mxu1 %v2492_v21 }
 0x4e7   :  { %1471 = vmatpush1.bf16.msra.mxu0 %v2864_v47  ;;  %1512 = vmatpush1.bf16.msra.mxu1 %v2979_v63 }
 0x4e8   :  { %1472 = vmatprep.subr.bf16.mxu0 %v2871_v48  ;;  %1513 = vmatprep.subr.bf16.mxu1 %v2986_v0 }
 0x4eb   :  { %1473 = vmatpush1.bf16.msra.mxu0 %v2880_v49  ;;  %1514 = vmatpush1.bf16.msra.mxu1 %v2992_v1 }
 0x4ec   :  { %1474 = vmatprep.subr.bf16.mxu0 %v2886_v50  ;;  %1515 = vmatprep.subr.bf16.mxu1 %v2998_v2 }
 0x4ef   :  { %1475 = vmatpush1.bf16.msra.mxu0 %v2894_v51  ;;  %1516 = vmatpush1.bf16.msra.mxu1 %v3004_v3 }
 0x4f0   :  { %1476 = vmatprep.subr.bf16.mxu0 %v2900_v52  ;;  %1517 = vmatprep.subr.bf16.mxu1 %v3010_v4 }
 0x4f3   :  { %1477 = vmatpush1.bf16.msra.mxu0 %v2908_v53  ;;  %1518 = vmatpush1.bf16.msra.mxu1 %v3016_v5 }
 0x4f4   :  { %1478 = vmatprep.subr.bf16.mxu0 %v2914_v54  ;;  %1519 = vmatprep.subr.bf16.mxu1 %v3022_v6 }
 0x4f7   :  { %1479 = vmatpush1.bf16.msra.mxu0 %v2922_v55  ;;  %1520 = vmatpush1.bf16.msra.mxu1 %v3028_v7 }
 0x4f8   :  { %1480 = vmatprep.subr.bf16.mxu0 %v2928_v56  ;;  %1521 = vmatprep.subr.bf16.mxu1 %v3034_v8 }
 0x4fb   :  { %1481 = vmatpush1.bf16.msra.mxu0 %v2936_v57  ;;  %1522 = vmatpush1.bf16.msra.mxu1 %v3040_v9 }
 0x4fc   :  { %1482 = vmatprep.subr.bf16.mxu0 %v2942_v58  ;;  %1523 = vmatprep.subr.bf16.mxu1 %v3046_v10 }
 0x4ff   :  { %1483 = vmatpush1.bf16.msra.mxu0 %v2950_v59  ;;  %1524 = vmatpush1.bf16.msra.mxu1 %v3052_v13 }
 0x500   :  { %1592 = vmatprep.subr.bf16.mxu0 %v2843_v25  ;;  %1633 = vmatprep.subr.bf16.mxu1 %v2956_v60 }
 0x5b5   :  { %v1378_v22 = vpop.f32.mrb[24].mxu0  ;;  %v1419_v19 = vpop.f32.mrb[20].mxu1 }
 0x5b6   :  { %v1430_v37 = vrot.slane %v1378_v22, 4  ;;  %v1380_v38 = vpop.f32.mrb[25].mxu0  ;;  %v1421_v14 = vpop.f32.mrb[21].mxu1  ;;  %v1432_v32 = vrot.slane %v1419_v19, 4 }
 0x5b7   :  { %v1431_v40 = vrot.slane %v1380_v38, 4  ;;  %v1382_v41 = vpop.f32.mrb[26].mxu0  ;;  %v1423_v42 = vpop.f32.mrb[22].mxu1  ;;  %v1433_v17 = vrot.slane %v1421_v14, 4 }
 0x5b8   :  { %v1438_v44 = vadd.f32 %v1430_v37, %v3094_v11  ;;  %v1383_v23 = vpop.f32.mrb[27].mxu0  ;;  %v1424_v18 = vpop.f32.mrb[23].mxu1  ;;  %v1440_v33 = vadd.f32 %v1432_v32, %v3100_v15 }
 0x5b9   :  { %v1439_v20 = vadd.f32 %v1431_v40, %v3092_v39  ;;  %v1441_v16 = vadd.f32 %v1433_v17, %v3098_v43  ;;  %v1456_v40 = vrot.slane %v3149_v29, 6 }
 0x5ba   :  { %v1442_v26 = vmul.f32 0.5, %v1438_v44  ;;  %v1444_v12 = vmul.f32 0.5, %v1440_v33 }
 0x5bb   :  { %v1443_v28 = vmul.f32 0.5, %v1439_v20 }
 0x5bc   :  { %2416 = vtanh.f32 %v1442_v26 }
 0x5bd   :  { %2418 = vtanh.f32 %v1443_v28 }
 0x5be   :  { %2420 = vtanh.f32 %v1441_v16 }
 0x5bf   :  { %2422 = vtanh.f32 %v1444_v12 }
 0x5c6   :  { %v2417_v24 = vpop.eup %2416 }
 0x5c7   :  { %v1448_v27 = vadd.f32 1.0, %v2417_v24  ;;  %v2419_v36 = vpop.eup %2418 }
 0x5c8   :  { %v1449_v37 = vadd.f32 1.0, %v2419_v36  ;;  %v2421_v38 = vpop.eup %2420 }
 0x5c9   :  { %v1451_v22 = vmul.f32 0.5, %v1448_v27  ;;  %v2423_v19 = vpop.eup %2422 }
 0x5ca   :  { %v1452_v14 = vmul.f32 0.5, %v1449_v37  ;;  %v1450_v17 = vadd.f32 1.0, %v2423_v19 }
 0x5cb   :  { %v1459_v41 = vmul.f32 %v2421_v38, %v1451_v22 }
 0x5cc   :  { %v1458_v42 = vmul.f32 %v1456_v40, %v1452_v14  ;;  %v1453_v23 = vmul.f32 0.5, %v1450_v17 }
 0x5ce   :  { %v3194_v44 = vadd.f32 %v1459_v41, %v1458_v42 }
 0x5d0   :  { %2424 = vtanh.f32 %v3194_v44 }
 0x5da   :  { %v2425_v18 = vpop.eup %2424 }
 0x5db   :  { %v1462_v20 = vmul.f32 %v2425_v18, %v1453_v23 }
 0x5dd   :  { %1463 = vst [vmem:[%s3419_s5] sm:$0x30] %v1462_v20  ;;  %v1464_v26 = vpack.c.bf16 %v1462_v20, %v1462_v20 }
 0x5df   :  { %v1466_v28 = vrot.slane %v1464_v26, 2 }
 0x5e1   :  { %1501 = vmatmul.mubr.bf16.vlgmr.msra.gmra.mrb[28].mxu0 %v1466_v28  ;;  %1542 = vmatmul.mubr.bf16.vlgmr.msra.gmra.mrb[24].mxu1 %v1466_v28 }
 0x5e2   :  { %1593 = vmatpush1.bf16.msra.mxu0 %v2853_v45  ;;  %1634 = vmatpush1.bf16.msra.mxu1 %v2964_v61 }
 0x5e3   :  { %1594 = vmatprep.subr.bf16.mxu0 %v2858_v46  ;;  %1635 = vmatprep.subr.bf16.mxu1 %v2970_v62 }
 0x5e4   :  { %1624 = vmatprep.mubr.bf16.mxu0 %v2492_v21  ;;  %1665 = vmatprep.mubr.bf16.mxu1 %v2492_v21 }
 0x5e6   :  { %1595 = vmatpush1.bf16.msra.mxu0 %v2864_v47  ;;  %1636 = vmatpush1.bf16.msra.mxu1 %v2979_v63 }
 0x5e7   :  { %1596 = vmatprep.subr.bf16.mxu0 %v2871_v48  ;;  %1637 = vmatprep.subr.bf16.mxu1 %v2986_v0 }
 0x5ea   :  { %1597 = vmatpush1.bf16.msra.mxu0 %v2880_v49  ;;  %1638 = vmatpush1.bf16.msra.mxu1 %v2992_v1 }
 0x5eb   :  { %1598 = vmatprep.subr.bf16.mxu0 %v2886_v50  ;;  %1639 = vmatprep.subr.bf16.mxu1 %v2998_v2 }
 0x5ee   :  { %1599 = vmatpush1.bf16.msra.mxu0 %v2894_v51  ;;  %1640 = vmatpush1.bf16.msra.mxu1 %v3004_v3 }
 0x5ef   :  { %1600 = vmatprep.subr.bf16.mxu0 %v2900_v52  ;;  %1641 = vmatprep.subr.bf16.mxu1 %v3010_v4 }
 0x5f2   :  { %1601 = vmatpush1.bf16.msra.mxu0 %v2908_v53  ;;  %1642 = vmatpush1.bf16.msra.mxu1 %v3016_v5 }
 0x5f3   :  { %1602 = vmatprep.subr.bf16.mxu0 %v2914_v54  ;;  %1643 = vmatprep.subr.bf16.mxu1 %v3022_v6 }
 0x5f6   :  { %1603 = vmatpush1.bf16.msra.mxu0 %v2922_v55  ;;  %1644 = vmatpush1.bf16.msra.mxu1 %v3028_v7 }
 0x5f7   :  { %1604 = vmatprep.subr.bf16.mxu0 %v2928_v56  ;;  %1645 = vmatprep.subr.bf16.mxu1 %v3034_v8 }
 0x5fa   :  { %1605 = vmatpush1.bf16.msra.mxu0 %v2936_v57  ;;  %1646 = vmatpush1.bf16.msra.mxu1 %v3040_v9 }
 0x5fb   :  { %1606 = vmatprep.subr.bf16.mxu0 %v2942_v58  ;;  %1647 = vmatprep.subr.bf16.mxu1 %v3046_v10 }
 0x5fe   :  { %1607 = vmatpush1.bf16.msra.mxu0 %v2950_v59  ;;  %1648 = vmatpush1.bf16.msra.mxu1 %v3052_v13 }
 0x5ff   :  { %1701 = vmatprep.subr.bf16.mxu0 %v2843_v25  ;;  %1742 = vmatprep.subr.bf16.mxu1 %v2956_v60 }
 0x6b4   :  { %v1502_v29 = vpop.f32.mrb[28].mxu0  ;;  %v1543_v16 = vpop.f32.mrb[24].mxu1 }
 0x6b5   :  { %v1554_v32 = vrot.slane %v1502_v29, 2  ;;  %v1504_v33 = vpop.f32.mrb[29].mxu0  ;;  %v1545_v12 = vpop.f32.mrb[25].mxu1  ;;  %v1556_v17 = vrot.slane %v1543_v16, 2 }
 0x6b6   :  { %v1555_v24 = vrot.slane %v1504_v33, 2  ;;  %v1506_v27 = vpop.f32.mrb[30].mxu0  ;;  %v1547_v36 = vpop.f32.mrb[26].mxu1  ;;  %v1557_v37 = vrot.slane %v1545_v12, 2 }
 0x6b7   :  { %v1562_v22 = vadd.f32 %v1554_v32, %v3094_v11  ;;  %v1507_v38 = vpop.f32.mrb[31].mxu0  ;;  %v1548_v14 = vpop.f32.mrb[27].mxu1  ;;  %v1564_v23 = vadd.f32 %v1556_v17, %v3100_v15 }
 0x6b8   :  { %v1563_v40 = vadd.f32 %v1555_v24, %v3092_v39  ;;  %v1565_v19 = vadd.f32 %v1557_v37, %v3098_v43  ;;  %v1580_v39 = vrot.slane %v3194_v44, 6 }
 0x6b9   :  { %v1566_v41 = vmul.f32 0.5, %v1562_v22  ;;  %v1568_v18 = vmul.f32 0.5, %v1564_v23 }
 0x6ba   :  { %v1567_v42 = vmul.f32 0.5, %v1563_v40 }
 0x6bb   :  { %2426 = vtanh.f32 %v1566_v41 }
 0x6bc   :  { %2428 = vtanh.f32 %v1567_v42 }
 0x6bd   :  { %2430 = vtanh.f32 %v1565_v19 }
 0x6be   :  { %2432 = vtanh.f32 %v1568_v18 }
 0x6c5   :  { %v2427_v20 = vpop.eup %2426 }
 0x6c6   :  { %v1572_v26 = vadd.f32 1.0, %v2427_v20  ;;  %v2429_v28 = vpop.eup %2428 }
 0x6c7   :  { %v1573_v29 = vadd.f32 1.0, %v2429_v28  ;;  %v2431_v32 = vpop.eup %2430 }
 0x6c8   :  { %v1575_v11 = vmul.f32 0.5, %v1572_v26  ;;  %v2433_v43 = vpop.eup %2432 }
 0x6c9   :  { %v1576_v33 = vmul.f32 0.5, %v1573_v29  ;;  %v1574_v16 = vadd.f32 1.0, %v2433_v43 }
 0x6ca   :  { %v1583_v12 = vmul.f32 %v2431_v32, %v1575_v11 }
 0x6cb   :  { %v1582_v24 = vmul.f32 %v1580_v39, %v1576_v33  ;;  %v1577_v15 = vmul.f32 0.5, %v1574_v16 }
 0x6cd   :  { %v3239_v27 = vadd.f32 %v1583_v12, %v1582_v24 }
 0x6cf   :  { %2434 = vtanh.f32 %v3239_v27 }
 0x6d9   :  { %v2435_v36 = vpop.eup %2434 }
 0x6da   :  { %v1586_v22 = vmul.f32 %v2435_v36, %v1577_v15  ;;  %v1692_v15 = vrot.slane %v3239_v27, 6 }
 0x6dc   :  { %1587 = vst [vmem:[%s3419_s5] sm:$0xc0] %v1586_v22  ;;  %v1588_v37 = vpack.c.bf16 %v1586_v22, %v1586_v22 }
 0x6de   :  { %v1590_v38 = vrot.slane %v1588_v37, 3 }
 0x6e0   :  { %1625 = vmatmul.mubr.bf16.vlgmr.msra.gmra.mrb[32].mxu0 %v1590_v38  ;;  %1666 = vmatmul.mubr.bf16.vlgmr.msra.gmra.mrb[28].mxu1 %v1590_v38 }
 0x6e1   :  { %1702 = vmatpush1.bf16.msra.mxu0 %v2853_v45  ;;  %1743 = vmatpush1.bf16.msra.mxu1 %v2964_v61 }
 0x6e2   :  { %1703 = vmatprep.subr.bf16.mxu0 %v2858_v46  ;;  %1744 = vmatprep.subr.bf16.mxu1 %v2970_v62 }
 0x6e3   :  { %1733 = vmatprep.mubr.bf16.mxu0 %v2492_v21  ;;  %1774 = vmatprep.mubr.bf16.mxu1 %v2492_v21 }
 0x6e5   :  { %1704 = vmatpush1.bf16.msra.mxu0 %v2864_v47  ;;  %1745 = vmatpush1.bf16.msra.mxu1 %v2979_v63 }
 0x6e6   :  { %1705 = vmatprep.subr.bf16.mxu0 %v2871_v48  ;;  %1746 = vmatprep.subr.bf16.mxu1 %v2986_v0 }
 0x6e9   :  { %1706 = vmatpush1.bf16.msra.mxu0 %v2880_v49  ;;  %1747 = vmatpush1.bf16.msra.mxu1 %v2992_v1 }
 0x6ea   :  { %1707 = vmatprep.subr.bf16.mxu0 %v2886_v50  ;;  %1748 = vmatprep.subr.bf16.mxu1 %v2998_v2 }
 0x6ed   :  { %1708 = vmatpush1.bf16.msra.mxu0 %v2894_v51  ;;  %1749 = vmatpush1.bf16.msra.mxu1 %v3004_v3 }
 0x6ee   :  { %1709 = vmatprep.subr.bf16.mxu0 %v2900_v52  ;;  %1750 = vmatprep.subr.bf16.mxu1 %v3010_v4 }
 0x6f1   :  { %1710 = vmatpush1.bf16.msra.mxu0 %v2908_v53  ;;  %1751 = vmatpush1.bf16.msra.mxu1 %v3016_v5 }
 0x6f2   :  { %1711 = vmatprep.subr.bf16.mxu0 %v2914_v54  ;;  %1752 = vmatprep.subr.bf16.mxu1 %v3022_v6 }
 0x6f5   :  { %1712 = vmatpush1.bf16.msra.mxu0 %v2922_v55  ;;  %1753 = vmatpush1.bf16.msra.mxu1 %v3028_v7 }
 0x6f6   :  { %1713 = vmatprep.subr.bf16.mxu0 %v2928_v56  ;;  %1754 = vmatprep.subr.bf16.mxu1 %v3034_v8 }
 0x6f9   :  { %1714 = vmatpush1.bf16.msra.mxu0 %v2936_v57  ;;  %1755 = vmatpush1.bf16.msra.mxu1 %v3040_v9 }
 0x6fa   :  { %1715 = vmatprep.subr.bf16.mxu0 %v2942_v58  ;;  %1756 = vmatprep.subr.bf16.mxu1 %v3046_v10 }
 0x6fd   :  { %1716 = vmatpush1.bf16.msra.mxu0 %v2950_v59  ;;  %1757 = vmatpush1.bf16.msra.mxu1 %v3052_v13 }
 0x6fe   :  { %1825 = vmatprep.subr.bf16.mxu0 %v2843_v25  ;;  %1866 = vmatprep.subr.bf16.mxu1 %v2956_v60 }
 0x7b3   :  { %v1626_v44 = vpop.f32.mrb[32].mxu0  ;;  %v1667_v14 = vpop.f32.mrb[28].mxu1 }
 0x7b4   :  { %v1674_v40 = vadd.f32 %v1626_v44, %v3084_v30  ;;  %v1628_v41 = vpop.f32.mrb[33].mxu0  ;;  %v1669_v42 = vpop.f32.mrb[29].mxu1  ;;  %v1676_v25 = vadd.f32 %v1667_v14, %v3086_v31 }
 0x7b5   :  { %v1675_v19 = vadd.f32 %v1628_v41, %v3088_v34  ;;  %v1630_v17 = vpop.f32.mrb[34].mxu0  ;;  %v1671_v23 = vpop.f32.mrb[30].mxu1  ;;  %v1677_v11 = vadd.f32 %v1669_v42, %v3090_v35 }
 0x7b6   :  { %v1678_v18 = vmul.f32 0.5, %v1674_v40  ;;  %v1631_v20 = vpop.f32.mrb[35].mxu0  ;;  %v1672_v26 = vpop.f32.mrb[31].mxu1  ;;  %v1680_v29 = vmul.f32 0.5, %v1676_v25 }
 0x7b7   :  { %v1679_v28 = vmul.f32 0.5, %v1675_v19 }
 0x7b8   :  { %2436 = vtanh.f32 %v1678_v18 }
 0x7b9   :  { %2438 = vtanh.f32 %v1679_v28 }
 0x7ba   :  { %2440 = vtanh.f32 %v1677_v11 }
 0x7bb   :  { %2442 = vtanh.f32 %v1680_v29 }
 0x7c2   :  { %v2437_v32 = vpop.eup %2436 }
 0x7c3   :  { %v1684_v33 = vadd.f32 1.0, %v2437_v32  ;;  %v2439_v39 = vpop.eup %2438 }
 0x7c4   :  { %v1685_v24 = vadd.f32 1.0, %v2439_v39  ;;  %v2441_v43 = vpop.eup %2440 }
 0x7c5   :  { %v1687_v12 = vmul.f32 0.5, %v1684_v33  ;;  %v2443_v38 = vpop.eup %2442 }
 0x7c6   :  { %v1688_v16 = vmul.f32 0.5, %v1685_v24  ;;  %v1686_v44 = vadd.f32 1.0, %v2443_v38 }
 0x7c7   :  { %v1695_v36 = vmul.f32 %v2441_v43, %v1687_v12 }
 0x7c8   :  { %v1694_v22 = vmul.f32 %v1692_v15, %v1688_v16  ;;  %v1689_v14 = vmul.f32 0.5, %v1686_v44  ;;  %v2478_v44 = vld [vmem:[%s3417_s3 + $0x224] ss:$16 sps:$4 sm:$0xff]  }
 0x7ca   :  { %v3284_v37 = vadd.f32 %v1695_v36, %v1694_v22 }
 0x7cc   :  { %2444 = vtanh.f32 %v3284_v37  ;;  %v1813_v32 = vrot.slane %v3284_v37, 6  ;;  %v2477_v37 = vld [vmem:[%s3417_s3 + $0x200] ss:$16 sps:$4 sm:$0xff]  }
 0x7d6   :  { %v2445_v40 = vpop.eup %2444 }
 0x7d7   :  { %v1698_v41 = vmul.f32 %v2445_v40, %v1689_v14  ;;  %v2479_v14 = vld [vmem:[%s3417_s3 + $0x220] ss:$16 sps:$4 sm:$0xff]  }
 0x7d9   :  { %1699 = vst [vmem:[%s3419_s5 + $0x8] sm:$0x3] %v1698_v41  ;;  %v1700_v42 = vpack.c.bf16 %v1698_v41, %v1698_v41 }
 0x7db   :  { %1734 = vmatmul.mubr.bf16.vlgmr.msra.gmra.mrb[36].mxu0 %v1700_v42  ;;  %1775 = vmatmul.mubr.bf16.vlgmr.msra.gmra.mrb[32].mxu1 %v1700_v42 }
 0x7dc   :  { %1826 = vmatpush1.bf16.msra.mxu0 %v2853_v45  ;;  %1867 = vmatpush1.bf16.msra.mxu1 %v2964_v61  ;;  %v2476_v45 = vld [vmem:[%s3417_s3 + $0x204] ss:$16 sps:$4 sm:$0xff]  }
 0x7dd   :  { %1827 = vmatprep.subr.bf16.mxu0 %v2858_v46  ;;  %1868 = vmatprep.subr.bf16.mxu1 %v2970_v62 }
 0x7de   :  { %1857 = vmatprep.mubr.bf16.mxu0 %v2492_v21  ;;  %1898 = vmatprep.mubr.bf16.mxu1 %v2492_v21 }
 0x7e0   :  { %1828 = vmatpush1.bf16.msra.mxu0 %v2864_v47  ;;  %1869 = vmatpush1.bf16.msra.mxu1 %v2979_v63 }
 0x7e1   :  { %1829 = vmatprep.subr.bf16.mxu0 %v2871_v48  ;;  %1870 = vmatprep.subr.bf16.mxu1 %v2986_v0 }
 0x7e4   :  { %1830 = vmatpush1.bf16.msra.mxu0 %v2880_v49  ;;  %1871 = vmatpush1.bf16.msra.mxu1 %v2992_v1 }
 0x7e5   :  { %1831 = vmatprep.subr.bf16.mxu0 %v2886_v50  ;;  %1872 = vmatprep.subr.bf16.mxu1 %v2998_v2 }
 0x7e8   :  { %1832 = vmatpush1.bf16.msra.mxu0 %v2894_v51  ;;  %1873 = vmatpush1.bf16.msra.mxu1 %v3004_v3 }
 0x7e9   :  { %1833 = vmatprep.subr.bf16.mxu0 %v2900_v52  ;;  %1874 = vmatprep.subr.bf16.mxu1 %v3010_v4 }
 0x7ec   :  { %1834 = vmatpush1.bf16.msra.mxu0 %v2908_v53  ;;  %1875 = vmatpush1.bf16.msra.mxu1 %v3016_v5 }
 0x7ed   :  { %1835 = vmatprep.subr.bf16.mxu0 %v2914_v54  ;;  %1876 = vmatprep.subr.bf16.mxu1 %v3022_v6 }
 0x7f0   :  { %1836 = vmatpush1.bf16.msra.mxu0 %v2922_v55  ;;  %1877 = vmatpush1.bf16.msra.mxu1 %v3028_v7 }
 0x7f1   :  { %1837 = vmatprep.subr.bf16.mxu0 %v2928_v56  ;;  %1878 = vmatprep.subr.bf16.mxu1 %v3034_v8 }
 0x7f4   :  { %1838 = vmatpush1.bf16.msra.mxu0 %v2936_v57  ;;  %1879 = vmatpush1.bf16.msra.mxu1 %v3040_v9 }
 0x7f5   :  { %1839 = vmatprep.subr.bf16.mxu0 %v2942_v58  ;;  %1880 = vmatprep.subr.bf16.mxu1 %v3046_v10 }
 0x7f8   :  { %1840 = vmatpush1.bf16.msra.mxu0 %v2950_v59  ;;  %1881 = vmatpush1.bf16.msra.mxu1 %v3052_v13 }
 0x7f9   :  { %1949 = vmatprep.subr.bf16.mxu0 %v2476_v45  ;;  %1990 = vmatprep.subr.bf16.mxu1 %v2956_v60 }
 0x8ae   :  { %v1735_v46 = vpop.f32.mrb[36].mxu0  ;;  %v1776_v47 = vpop.f32.mrb[32].mxu1 }
 0x8af   :  { %v1787_v48 = vrot.slane %v1735_v46, 6  ;;  %v1737_v49 = vpop.f32.mrb[37].mxu0  ;;  %v1778_v50 = vpop.f32.mrb[33].mxu1  ;;  %v1789_v19 = vrot.slane %v1776_v47, 6 }
 0x8b0   :  { %v1788_v51 = vrot.slane %v1737_v49, 6  ;;  %v1739_v52 = vpop.f32.mrb[38].mxu0  ;;  %v1780_v53 = vpop.f32.mrb[34].mxu1  ;;  %v1790_v55 = vrot.slane %v1778_v50, 6 }
 0x8b1   :  { %v1795_v54 = vadd.f32 %v1787_v48, %v3084_v30  ;;  %v1740_v56 = vpop.f32.mrb[39].mxu0  ;;  %v1781_v57 = vpop.f32.mrb[35].mxu1  ;;  %v1797_v17 = vadd.f32 %v1789_v19, %v3086_v31 }
 0x8b2   :  { %v1796_v58 = vadd.f32 %v1788_v51, %v3088_v34  ;;  %v1798_v60 = vadd.f32 %v1790_v55, %v3090_v35 }
 0x8b3   :  { %v1799_v59 = vmul.f32 0.5, %v1795_v54  ;;  %v1801_v23 = vmul.f32 0.5, %v1797_v17 }
 0x8b4   :  { %v1800_v27 = vmul.f32 0.5, %v1796_v58 }
 0x8b5   :  { %2446 = vtanh.f32 %v1799_v59 }
 0x8b6   :  { %2448 = vtanh.f32 %v1800_v27 }
 0x8b7   :  { %2450 = vtanh.f32 %v1798_v60 }
 0x8b8   :  { %2452 = vtanh.f32 %v1801_v23 }
 0x8bf   :  { %v2447_v18 = vpop.eup %2446 }
 0x8c0   :  { %v1805_v20 = vadd.f32 1.0, %v2447_v18  ;;  %v2449_v26 = vpop.eup %2448 }
 0x8c1   :  { %v1806_v11 = vadd.f32 1.0, %v2449_v26  ;;  %v2451_v25 = vpop.eup %2450 }
 0x8c2   :  { %v1808_v28 = vmul.f32 0.5, %v1805_v20  ;;  %v2453_v24 = vpop.eup %2452 }
 0x8c3   :  { %v1809_v29 = vmul.f32 0.5, %v1806_v11  ;;  %v1807_v43 = vadd.f32 1.0, %v2453_v24 }
 0x8c4   :  { %v1816_v33 = vmul.f32 %v2451_v25, %v1808_v28 }
 0x8c5   :  { %v1815_v39 = vmul.f32 %v1813_v32, %v1809_v29  ;;  %v1810_v16 = vmul.f32 0.5, %v1807_v43 }
 0x8c7   :  { %v3331_v12 = vadd.f32 %v1816_v33, %v1815_v39 }
 0x8c9   :  { %2454 = vtanh.f32 %v3331_v12  ;;  %v1937_v23 = vrot.slane %v3331_v12, 6 }
 0x8d3   :  { %v2455_v15 = vpop.eup %2454 }
 0x8d4   :  { %v1819_v36 = vmul.f32 %v2455_v15, %v1810_v16 }
 0x8d6   :  { %1820 = vst [vmem:[%s3419_s5 + $0x8] sm:$0xc] %v1819_v36  ;;  %v1821_v22 = vpack.c.bf16 %v1819_v36, %v1819_v36 }
 0x8d8   :  { %v1823_v38 = vrot.slane %v1821_v22, 1 }
 0x8da   :  { %1858 = vmatmul.mubr.bf16.vlgmr.msra.gmra.mrb[40].mxu0 %v1823_v38  ;;  %1899 = vmatmul.mubr.bf16.vlgmr.msra.gmra.mrb[36].mxu1 %v1823_v38 }
 0x8db   :  { %1950 = vmatpush1.bf16.msra.mxu0 %v2477_v37  ;;  %1991 = vmatpush1.bf16.msra.mxu1 %v2964_v61  ;;  %v2480_v61 = vld [vmem:[%s3417_s3 + $0x244] ss:$16 sps:$4 sm:$0xff]  }
 0x8dc   :  { %1951 = vmatprep.subr.bf16.mxu0 %v2478_v44  ;;  %1992 = vmatprep.subr.bf16.mxu1 %v2970_v62  ;;  %v2481_v62 = vld [vmem:[%s3417_s3 + $0x240] ss:$16 sps:$4 sm:$0xff]  }
 0x8dd   :  { %1981 = vmatprep.mubr.bf16.mxu0 %v2492_v21  ;;  %2022 = vmatprep.mubr.bf16.mxu1 %v2492_v21  ;;  %v2482_v21 = vld [vmem:[%s3417_s3 + $0x264] ss:$16 sps:$4 sm:$0xff]  }
 0x8df   :  { %1952 = vmatpush1.bf16.msra.mxu0 %v2479_v14  ;;  %1993 = vmatpush1.bf16.msra.mxu1 %v2979_v63  ;;  %v2483_v63 = vld [vmem:[%s3417_s3 + $0x260] ss:$16 sps:$4 sm:$0xff]  }
 0x8e0   :  { %1953 = vmatprep.subr.bf16.mxu0 %v2480_v61  ;;  %1994 = vmatprep.subr.bf16.mxu1 %v2986_v0  ;;  %v2484_v0 = vld [vmem:[%s3417_s3 + $0x284] ss:$16 sps:$4 sm:$0xff]  }
 0x8e3   :  { %1954 = vmatpush1.bf16.msra.mxu0 %v2481_v62  ;;  %1995 = vmatpush1.bf16.msra.mxu1 %v2992_v1  ;;  %v2485_v1 = vld [vmem:[%s3417_s3 + $0x280] ss:$16 sps:$4 sm:$0xff]  }
 0x8e4   :  { %1955 = vmatprep.subr.bf16.mxu0 %v2482_v21  ;;  %1996 = vmatprep.subr.bf16.mxu1 %v2998_v2  ;;  %v2486_v2 = vld [vmem:[%s3417_s3 + $0x2a4] ss:$16 sps:$4 sm:$0xff]  }
 0x8e7   :  { %1956 = vmatpush1.bf16.msra.mxu0 %v2483_v63  ;;  %1997 = vmatpush1.bf16.msra.mxu1 %v3004_v3  ;;  %v2487_v3 = vld [vmem:[%s3417_s3 + $0x2a0] ss:$16 sps:$4 sm:$0xff]  }
 0x8e8   :  { %1957 = vmatprep.subr.bf16.mxu0 %v2484_v0  ;;  %1998 = vmatprep.subr.bf16.mxu1 %v3010_v4  ;;  %v2488_v4 = vld [vmem:[%s3417_s3 + $0x2c4] ss:$16 sps:$4 sm:$0xff]  }
 0x8eb   :  { %1958 = vmatpush1.bf16.msra.mxu0 %v2485_v1  ;;  %1999 = vmatpush1.bf16.msra.mxu1 %v3016_v5  ;;  %v2489_v5 = vld [vmem:[%s3417_s3 + $0x2c0] ss:$16 sps:$4 sm:$0xff]  }
 0x8ec   :  { %1959 = vmatprep.subr.bf16.mxu0 %v2486_v2  ;;  %2000 = vmatprep.subr.bf16.mxu1 %v3022_v6  ;;  %v2490_v6 = vld [vmem:[%s3417_s3 + $0x2e4] ss:$16 sps:$4 sm:$0xff]  }
 0x8ef   :  { %1960 = vmatpush1.bf16.msra.mxu0 %v2487_v3  ;;  %2001 = vmatpush1.bf16.msra.mxu1 %v3028_v7  ;;  %v2491_v7 = vld [vmem:[%s3417_s3 + $0x2e0] ss:$16 sps:$4 sm:$0xff]  }
 0x8f0   :  { %1961 = vmatprep.subr.bf16.mxu0 %v2488_v4  ;;  %2002 = vmatprep.subr.bf16.mxu1 %v3034_v8 }
 0x8f3   :  { %1962 = vmatpush1.bf16.msra.mxu0 %v2489_v5  ;;  %2003 = vmatpush1.bf16.msra.mxu1 %v3040_v9 }
 0x8f4   :  { %1963 = vmatprep.subr.bf16.mxu0 %v2490_v6  ;;  %2004 = vmatprep.subr.bf16.mxu1 %v3046_v10 }
 0x8f7   :  { %1964 = vmatpush1.bf16.msra.mxu0 %v2491_v7  ;;  %2005 = vmatpush1.bf16.msra.mxu1 %v3052_v13 }
 0x9ad   :  { %v1859_v8 = vpop.f32.mrb[40].mxu0  ;;  %v1900_v40 = vpop.f32.mrb[36].mxu1 }
 0x9ae   :  { %v1911_v41 = vrot.slane %v1859_v8, 4  ;;  %v1861_v42 = vpop.f32.mrb[41].mxu0  ;;  %v1902_v45 = vpop.f32.mrb[37].mxu1  ;;  %v1913_v54 = vrot.slane %v1900_v40, 4 }
 0x9af   :  { %v1912_v9 = vrot.slane %v1861_v42, 4  ;;  %v1863_v46 = vpop.f32.mrb[42].mxu0  ;;  %v1904_v47 = vpop.f32.mrb[38].mxu1  ;;  %v1914_v49 = vrot.slane %v1902_v45, 4 }
 0x9b0   :  { %v1919_v48 = vadd.f32 %v1911_v41, %v3084_v30  ;;  %v1864_v50 = vpop.f32.mrb[43].mxu0  ;;  %v1905_v10 = vpop.f32.mrb[39].mxu1  ;;  %v1921_v55 = vadd.f32 %v1913_v54, %v3086_v31 }
 0x9b1   :  { %v1920_v51 = vadd.f32 %v1912_v9, %v3088_v34  ;;  %v1922_v13 = vadd.f32 %v1914_v49, %v3090_v35 }
 0x9b2   :  { %v1923_v52 = vmul.f32 0.5, %v1919_v48  ;;  %v1925_v56 = vmul.f32 0.5, %v1921_v55 }
 0x9b3   :  { %v1924_v53 = vmul.f32 0.5, %v1920_v51 }
 0x9b4   :  { %2456 = vtanh.f32 %v1923_v52 }
 0x9b5   :  { %2458 = vtanh.f32 %v1924_v53 }
 0x9b6   :  { %2460 = vtanh.f32 %v1922_v13 }
 0x9b7   :  { %2462 = vtanh.f32 %v1925_v56 }
 0x9be   :  { %v2457_v57 = vpop.eup %2456 }
 0x9bf   :  { %v1929_v58 = vadd.f32 1.0, %v2457_v57  ;;  %v2459_v59 = vpop.eup %2458 }
 0x9c0   :  { %v1930_v60 = vadd.f32 1.0, %v2459_v59  ;;  %v2461_v19 = vpop.eup %2460 }
 0x9c1   :  { %v1932_v27 = vmul.f32 0.5, %v1929_v58  ;;  %v2463_v28 = vpop.eup %2462 }
 0x9c2   :  { %v1933_v17 = vmul.f32 0.5, %v1930_v60  ;;  %v1931_v11 = vadd.f32 1.0, %v2463_v28 }
 0x9c3   :  { %v1940_v18 = vmul.f32 %v2461_v19, %v1932_v27 }
 0x9c4   :  { %v1939_v20 = vmul.f32 %v1937_v23, %v1933_v17  ;;  %v1934_v25 = vmul.f32 0.5, %v1931_v11 }
 0x9c6   :  { %v1941_v26 = vadd.f32 %v1940_v18, %v1939_v20 }
 0x9c8   :  { %2464 = vtanh.f32 %v1941_v26 }
 0x9d2   :  { %v2465_v29 = vpop.eup %2464 }
 0x9d3   :  { %v1943_v32 = vmul.f32 %v2465_v29, %v1934_v25 }
 0x9d5   :  { %1944 = vst [vmem:[%s3419_s5 + $0x8] sm:$0x30] %v1943_v32  ;;  %v1945_v33 = vpack.c.bf16 %v1943_v32, %v1943_v32 }
 0x9d7   :  { %v1947_v39 = vrot.slane %v1945_v33, 2 }
 0x9d9   :  { %1982 = vmatmul.mubr.bf16.vlgmr.msra.gmra.mrb[44].mxu0 %v1947_v39  ;;  %2023 = vmatmul.mubr.bf16.vlgmr.msra.gmra.mrb[40].mxu1 %v1947_v39 }
 0xaac   :  { %v1983_v24 = vpop.f32.mrb[44].mxu0  ;;  %v2024_v43 = vpop.f32.mrb[40].mxu1 }
 0xaad   :  { %v2035_v12 = vrot.slane %v1983_v24, 2  ;;  %v1985_v16 = vpop.f32.mrb[45].mxu0  ;;  %v2026_v15 = vpop.f32.mrb[41].mxu1  ;;  %v2037_v1 = vrot.slane %v2024_v43, 2 }
 0xaae   :  { %v2036_v36 = vrot.slane %v1985_v16, 2  ;;  %v1987_v22 = vpop.f32.mrb[46].mxu0  ;;  %v2028_v38 = vpop.f32.mrb[42].mxu1  ;;  %v2038_v44 = vrot.slane %v2026_v15, 2 }
 0xaaf   :  { %v2043_v37 = vadd.f32 %v2035_v12, %v3084_v30  ;;  %v1988_v14 = vpop.f32.mrb[47].mxu0  ;;  %v2029_v61 = vpop.f32.mrb[43].mxu1  ;;  %v2045_v2 = vadd.f32 %v2037_v1, %v3086_v31 }
 0xab0   :  { %v2044_v62 = vadd.f32 %v2036_v36, %v3088_v34  ;;  %v2046_v0 = vadd.f32 %v2038_v44, %v3090_v35  ;;  %v2061_v34 = vrot.slane %v1941_v26, 6 }
 0xab1   :  { %v2047_v21 = vmul.f32 0.5, %v2043_v37  ;;  %v2049_v3 = vmul.f32 0.5, %v2045_v2 }
 0xab2   :  { %v2048_v63 = vmul.f32 0.5, %v2044_v62 }
 0xab3   :  { %2466 = vtanh.f32 %v2047_v21 }
 0xab4   :  { %2468 = vtanh.f32 %v2048_v63 }
 0xab5   :  { %2470 = vtanh.f32 %v2046_v0 }
 0xab6   :  { %2472 = vtanh.f32 %v2049_v3 }
 0xabd   :  { %v2467_v4 = vpop.eup %2466 }
 0xabe   :  { %v2053_v5 = vadd.f32 1.0, %v2467_v4  ;;  %v2469_v6 = vpop.eup %2468 }
 0xabf   :  { %v2054_v7 = vadd.f32 1.0, %v2469_v6  ;;  %v2471_v8 = vpop.eup %2470 }
 0xac0   :  { %v2056_v30 = vmul.f32 0.5, %v2053_v5  ;;  %v2473_v35 = vpop.eup %2472 }
 0xac1   :  { %v2057_v40 = vmul.f32 0.5, %v2054_v7  ;;  %v2055_v9 = vadd.f32 1.0, %v2473_v35 }
 0xac2   :  { %v2064_v41 = vmul.f32 %v2471_v8, %v2056_v30 }
 0xac3   :  { %v2063_v42 = vmul.f32 %v2061_v34, %v2057_v40  ;;  %v2058_v46 = vmul.f32 0.5, %v2055_v9 }
 0xac5   :  { %v2065_v45 = vadd.f32 %v2064_v41, %v2063_v42 }
 0xac7   :  { %2474 = vtanh.f32 %v2065_v45 }
 0xad1   :  { %v2475_v47 = vpop.eup %2474 }
 0xad2   :  { %v2067_v48 = vmul.f32 %v2475_v47, %v2058_v46 }
 0xad4   :  { %2068 = vst [vmem:[%s3419_s5 + $0x8] sm:$0xc0] %v2067_v48 }

</bundles_post_ra>
